<compile_context>
chip_gen: v7x
topology: tpu7x:2x2x1
jax: 0.10.0
libtpu: 0.0.40
codegen_flags: <defaults>
</compile_context>

<pallas_src>
import functools

import jax
import jax.numpy as jnp
import numpy as np
from jax.experimental import pallas as pl
from jax.experimental.pallas import tpu as pltpu


# ---------------------------------------------------------------------------
# Kernel: whole GenerativeNet forward for one batch tile.
# ---------------------------------------------------------------------------
def _fused_kernel(y_ref, z_ref, wyy_ref, byy_ref,
                  w1_ref, b1_ref, w2_ref, b2_ref, w3_ref, b3_ref,
                  pzy_ref, x_ref, *, z_dim, mxu_dtype):
    f32 = jnp.float32

    # ---- pzy: one matmul producing [mu | var_logits]; softplus on var half only.
    y = y_ref[...]
    zy = jnp.dot(y, wyy_ref[...], preferred_element_type=f32) + byy_ref[...]
    # Numerically stable softplus (matches F.softplus): max(v,0) + log1p(exp(-|v|)).
    sp = jnp.maximum(zy, 0.0) + jnp.log1p(jnp.exp(-jnp.abs(zy)))
    col = jax.lax.broadcasted_iota(jnp.int32, zy.shape, 1)
    pzy_ref[...] = jnp.where(col < z_dim, zy, sp).astype(pzy_ref.dtype)

    # ---- pxz: fused 3-layer MLP; 512-wide intermediates never touch HBM.
    # Weights already arrive in `mxu_dtype`; only activations are cast here, and
    # only at the matmul boundary (elementwise math stays f32 — v5e friendly).
    h = jnp.dot(z_ref[...].astype(mxu_dtype), w1_ref[...],
                preferred_element_type=f32) + b1_ref[...]
    h = jnp.maximum(h, 0.0)
    h = jnp.dot(h.astype(mxu_dtype), w2_ref[...],
                preferred_element_type=f32) + b2_ref[...]
    h = jnp.maximum(h, 0.0)
    logits = jnp.dot(h.astype(mxu_dtype), w3_ref[...],
                     preferred_element_type=f32) + b3_ref[...]
    x_ref[...] = jax.nn.sigmoid(logits).astype(x_ref.dtype)


# ---------------------------------------------------------------------------
# Wrapper
# ---------------------------------------------------------------------------
def _round_up(n, m):
    return ((n + m - 1) // m) * m


def _batch_tile(b, cap=512):
    """Sublane-aligned batch tile; guarantees >=2 grid steps when B > 8 so both
    v7x TensorCores get work, capped at 512 rows (per-step overhead vs VMEM)."""
    b8 = _round_up(max(b, 1), 8)
    if b8 <= 8:
        return 8
    return min(cap, _round_up(-(-b8 // 2), 8))


def generative_net_forward(z, y, params, *, mxu_dtype=jnp.float32):
    """Pallas equivalent of GenerativeNet.forward(z, y).

    params weights are stored as (in_dim, out_dim) so the kernel computes x @ W + b.
    """
    b, z_dim_in = z.shape
    assert y.shape[0] == b
    y_dim = y.shape[1]
    z_dim = params["w_mu"].shape[1]
    h1 = params["w1"].shape[1]
    h2 = params["w2"].shape[1]
    x_dim = params["w3"].shape[1]

    # --- weight prep (tiny; would be hoisted/constant-folded under jit) ------
    # TODO(synk): pre-concatenate / pre-cast at parameter-load time to avoid
    # re-tracing these trivial ops on every call outside jit.
    w_yy = jnp.concatenate([params["w_mu"], params["w_var"]], axis=1)          # (y_dim, 2*z_dim)
    b_yy = jnp.concatenate([params["b_mu"], params["b_var"]], axis=0)
    b_yy = b_yy.reshape(1, 2 * z_dim).astype(jnp.float32)
    w1 = params["w1"].astype(mxu_dtype)
    w2 = params["w2"].astype(mxu_dtype)
    w3 = params["w3"].astype(mxu_dtype)
    b1 = params["b1"].reshape(1, h1).astype(jnp.float32)
    b2 = params["b2"].reshape(1, h2).astype(jnp.float32)
    b3 = params["b3"].reshape(1, x_dim).astype(jnp.float32)

    # --- batch tiling ---------------------------------------------------------
    tb = _batch_tile(b)
    b_pad = _round_up(b, tb)
    if b_pad != b:
        z_p = jnp.pad(z, ((0, b_pad - b), (0, 0)))
        y_p = jnp.pad(y, ((0, b_pad - b), (0, 0)))
    else:
        z_p, y_p = z, y
    grid = (b_pad // tb,)

    const = lambda shape: pl.BlockSpec(shape, lambda i: (0, 0))   # weights stay resident
    row = lambda d: pl.BlockSpec((tb, d), lambda i: (i, 0))       # batch-tiled rows

    kernel = functools.partial(_fused_kernel, z_dim=z_dim, mxu_dtype=mxu_dtype)

    pzy_out, x_rec = pl.pallas_call(
        kernel,
        out_shape=(
            jax.ShapeDtypeStruct((b_pad, 2 * z_dim), y.dtype),
            jax.ShapeDtypeStruct((b_pad, x_dim), z.dtype),
        ),
        grid_spec=pltpu.PrefetchScalarGridSpec(
            num_scalar_prefetch=0,
            grid=grid,
            in_specs=[
                row(y_dim), row(z_dim_in),
                const((y_dim, 2 * z_dim)), const((1, 2 * z_dim)),
                const((z_dim_in, h1)), const((1, h1)),
                const((h1, h2)), const((1, h2)),
                const((h2, x_dim)), const((1, x_dim)),
            ],
            out_specs=[row(2 * z_dim), row(x_dim)],
        ),
        compiler_params=pltpu.CompilerParams(
            dimension_semantics=("parallel",),
            vmem_limit_bytes=32 * 1024 * 1024,
        ),
    )(y_p, z_p, w_yy, b_yy, w1, b1, w2, b2, w3, b3)

    y_mu = pzy_out[:b, :z_dim]
    y_var = pzy_out[:b, z_dim:]
    x_rec = x_rec[:b]
    return {"y_mean": y_mu, "y_var": y_var, "x_rec": x_rec}


# ---------------------------------------------------------------------------
# Pure numpy float64 reference (mirrors the PyTorch module)
# ---------------------------------------------------------------------------
def _reference_forward_np(z, y, p):
    zd = np.asarray(z, np.float64)
    yd = np.asarray(y, np.float64)
    pd = {k: np.asarray(v, np.float64) for k, v in p.items()}
    y_mu = yd @ pd["w_mu"] + pd["b_mu"]
    v = yd @ pd["w_var"] + pd["b_var"]
    y_var = np.maximum(v, 0.0) + np.log1p(np.exp(-np.abs(v)))
    h = np.maximum(zd @ pd["w1"] + pd["b1"], 0.0)
    h = np.maximum(h @ pd["w2"] + pd["b2"], 0.0)
    x_rec = 1.0 / (1.0 + np.exp(-(h @ pd["w3"] + pd["b3"])))
    return {"y_mean": y_mu, "y_var": y_var, "x_rec": x_rec}


if __name__ == "__main__":
    key = jax.random.PRNGKey(0)

    # Small shapes consistent with the module: hidden layers fixed at 512.
    B, y_dim, z_dim, x_dim, H = 8, 32, 32, 256, 512

    keys = jax.random.split(key, 12)
    scale = 0.05
    params = {
        # Stored as (in_dim, out_dim) so the kernel computes x @ W + b directly.
        "w_mu": scale * jax.random.normal(keys[0], (y_dim, z_dim), jnp.float32),
        "b_mu": scale * jax.random.normal(keys[1], (z_dim,), jnp.float32),
        "w_var": scale * jax.random.normal(keys[2], (y_dim, z_dim), jnp.float32),
        "b_var": scale * jax.random.normal(keys[3], (z_dim,), jnp.float32),
        "w1": scale * jax.random.normal(keys[4], (z_dim, H), jnp.float32),
        "b1": scale * jax.random.normal(keys[5], (H,), jnp.float32),
        "w2": scale * jax.random.normal(keys[6], (H, H), jnp.float32),
        "b2": scale * jax.random.normal(keys[7], (H,), jnp.float32),
        "w3": scale * jax.random.normal(keys[8], (H, x_dim), jnp.float32),
        "b3": scale * jax.random.normal(keys[9], (x_dim,), jnp.float32),
    }
    z = jax.random.normal(keys[10], (B, z_dim), jnp.float32)
    y = jax.random.normal(keys[11], (B, y_dim), jnp.float32)

    out = generative_net_forward(z, y, params)   # default f32 MXU path
    out = jax.block_until_ready(out)

    ref = _reference_forward_np(z, y, params)

    assert out["y_mean"].shape == (B, z_dim)
    assert out["y_var"].shape == (B, z_dim)
    assert out["x_rec"].shape == (B, x_dim)

    # Tolerance accommodates f32 MXU pass decomposition across TPU generations
    # (semantic bugs — missing softplus / sigmoid / ReLU — are orders of
    # magnitude larger than this).
    tol = 2e-3
    np.testing.assert_allclose(np.asarray(out["y_mean"]), ref["y_mean"], rtol=tol, atol=tol)
    np.testing.assert_allclose(np.asarray(out["y_var"]), ref["y_var"], rtol=tol, atol=tol)
    np.testing.assert_allclose(np.asarray(out["x_rec"]), ref["x_rec"], rtol=tol, atol=tol)

    print("KERNEL_OK")
</pallas_src>

<mosaic_0001>
module attributes {stable_mosaic.version = 11 : i64} {
  func.func @_fused_kernel(%arg0: i32, %arg1: memref<8x32xf32, #tpu.memory_space<vmem>>, %arg2: memref<8x32xf32, #tpu.memory_space<vmem>>, %arg3: memref<32x64xf32, #tpu.memory_space<vmem>>, %arg4: memref<1x64xf32, #tpu.memory_space<vmem>>, %arg5: memref<32x512xf32, #tpu.memory_space<vmem>>, %arg6: memref<1x512xf32, #tpu.memory_space<vmem>>, %arg7: memref<512x512xf32, #tpu.memory_space<vmem>>, %arg8: memref<1x512xf32, #tpu.memory_space<vmem>>, %arg9: memref<512x256xf32, #tpu.memory_space<vmem>>, %arg10: memref<1x256xf32, #tpu.memory_space<vmem>>, %arg11: memref<8x64xf32, #tpu.memory_space<vmem>>, %arg12: memref<8x256xf32, #tpu.memory_space<vmem>>) attributes {dimension_semantics = [#tpu.dimension_semantics<parallel>], iteration_bounds = array<i64: 1>, scalar_prefetch = 0 : i64, scratch_operands = 0 : i64, tpu.core_type = #tpu.core_type<tc>, window_params = [{transform_indices = @transform_0, window_bounds = array<i64: 8, 32>}, {transform_indices = @transform_1, window_bounds = array<i64: 8, 32>}, {pipeline_mode = #tpu.pipeline_mode<synchronous>, transform_indices = @transform_2, window_bounds = array<i64: 32, 64>}, {pipeline_mode = #tpu.pipeline_mode<synchronous>, transform_indices = @transform_3, window_bounds = array<i64: 1, 64>}, {pipeline_mode = #tpu.pipeline_mode<synchronous>, transform_indices = @transform_4, window_bounds = array<i64: 32, 512>}, {pipeline_mode = #tpu.pipeline_mode<synchronous>, transform_indices = @transform_5, window_bounds = array<i64: 1, 512>}, {pipeline_mode = #tpu.pipeline_mode<synchronous>, transform_indices = @transform_6, window_bounds = array<i64: 512, 512>}, {pipeline_mode = #tpu.pipeline_mode<synchronous>, transform_indices = @transform_7, window_bounds = array<i64: 1, 512>}, {pipeline_mode = #tpu.pipeline_mode<synchronous>, transform_indices = @transform_8, window_bounds = array<i64: 512, 256>}, {pipeline_mode = #tpu.pipeline_mode<synchronous>, transform_indices = @transform_9, window_bounds = array<i64: 1, 256>}, {transform_indices = @transform_10, window_bounds = array<i64: 8, 64>}, {transform_indices = @transform_11, window_bounds = array<i64: 8, 256>}]} {
    %c0 = arith.constant 0 : index
    %c0_0 = arith.constant 0 : index
    %0 = vector.load %arg1[%c0, %c0_0] : memref<8x32xf32, #tpu.memory_space<vmem>>, vector<8x32xf32>
    %c0_1 = arith.constant 0 : index
    %c0_2 = arith.constant 0 : index
    %1 = vector.load %arg3[%c0_1, %c0_2] : memref<32x64xf32, #tpu.memory_space<vmem>>, vector<32x64xf32>
    %cst = arith.constant dense<0.000000e+00> : vector<8x64xf32>
    %2 = tpu.matmul %0, %1, %cst {dimension_numbers = #tpu.dot_dimension_numbers<[1], [0], [0], [1], [0, 0, 1, 1], [], []>} : vector<8x32xf32>, vector<32x64xf32>, vector<8x64xf32> -> vector<8x64xf32>
    %c0_3 = arith.constant 0 : index
    %c0_4 = arith.constant 0 : index
    %3 = vector.load %arg4[%c0_3, %c0_4] : memref<1x64xf32, #tpu.memory_space<vmem>>, vector<1x64xf32>
    %4 = vector.broadcast %3 : vector<1x64xf32> to vector<8x64xf32>
    %5 = arith.addf %2, %4 : vector<8x64xf32>
    %cst_5 = arith.constant 0.000000e+00 : f32
    %6 = vector.broadcast %cst_5 : f32 to vector<8x64xf32>
    %7 = arith.maximumf %5, %6 : vector<8x64xf32>
    %8 = math.absf %5 : vector<8x64xf32>
    %cst_6 = arith.constant 0.000000e+00 : f32
    %9 = vector.broadcast %cst_6 : f32 to vector<8x64xf32>
    %10 = arith.subf %9, %8 : vector<8x64xf32>
    %11 = math.exp %10 : vector<8x64xf32>
    %12 = math.log1p %11 : vector<8x64xf32>
    %13 = arith.addf %7, %12 : vector<8x64xf32>
    %14 = tpu.iota {dimensions = array<i32: 1>} : vector<8x64xi32>
    %c32_i32 = arith.constant 32 : i32
    %15 = vector.broadcast %c32_i32 : i32 to vector<8x64xi32>
    %16 = arith.cmpi slt, %14, %15 : vector<8x64xi32>
    %17 = arith.select %16, %5, %13 : vector<8x64xi1>, vector<8x64xf32>
    %c0_7 = arith.constant 0 : index
    %c0_8 = arith.constant 0 : index
    %18 = vector.load %arg11[%c0_7, %c0_8] : memref<8x64xf32, #tpu.memory_space<vmem>>, vector<8x64xf32>
    tpu.vector_store %arg11[%c0_7, %c0_8], %17 {strides = array<i32>} : memref<8x64xf32, #tpu.memory_space<vmem>>, vector<8x64xf32>,
    %c0_9 = arith.constant 0 : index
    %c0_10 = arith.constant 0 : index
    %19 = vector.load %arg2[%c0_9, %c0_10] : memref<8x32xf32, #tpu.memory_space<vmem>>, vector<8x32xf32>
    %c0_11 = arith.constant 0 : index
    %c0_12 = arith.constant 0 : index
    %20 = vector.load %arg5[%c0_11, %c0_12] : memref<32x512xf32, #tpu.memory_space<vmem>>, vector<32x512xf32>
    %cst_13 = arith.constant dense<0.000000e+00> : vector<8x512xf32>
    %21 = tpu.matmul %19, %20, %cst_13 {dimension_numbers = #tpu.dot_dimension_numbers<[1], [0], [0], [1], [0, 0, 1, 1], [], []>} : vector<8x32xf32>, vector<32x512xf32>, vector<8x512xf32> -> vector<8x512xf32>
    %c0_14 = arith.constant 0 : index
    %c0_15 = arith.constant 0 : index
    %22 = vector.load %arg6[%c0_14, %c0_15] : memref<1x512xf32, #tpu.memory_space<vmem>>, vector<1x512xf32>
    %23 = vector.broadcast %22 : vector<1x512xf32> to vector<8x512xf32>
    %24 = arith.addf %21, %23 : vector<8x512xf32>
    %cst_16 = arith.constant 0.000000e+00 : f32
    %25 = vector.broadcast %cst_16 : f32 to vector<8x512xf32>
    %26 = arith.maximumf %24, %25 : vector<8x512xf32>
    %c0_17 = arith.constant 0 : index
    %c0_18 = arith.constant 0 : index
    %27 = vector.load %arg7[%c0_17, %c0_18] : memref<512x512xf32, #tpu.memory_space<vmem>>, vector<512x512xf32>
    %cst_19 = arith.constant dense<0.000000e+00> : vector<8x512xf32>
    %28 = tpu.matmul %26, %27, %cst_19 {dimension_numbers = #tpu.dot_dimension_numbers<[1], [0], [0], [1], [0, 0, 1, 1], [], []>} : vector<8x512xf32>, vector<512x512xf32>, vector<8x512xf32> -> vector<8x512xf32>
    %c0_20 = arith.constant 0 : index
    %c0_21 = arith.constant 0 : index
    %29 = vector.load %arg8[%c0_20, %c0_21] : memref<1x512xf32, #tpu.memory_space<vmem>>, vector<1x512xf32>
    %30 = vector.broadcast %29 : vector<1x512xf32> to vector<8x512xf32>
    %31 = arith.addf %28, %30 : vector<8x512xf32>
    %cst_22 = arith.constant 0.000000e+00 : f32
    %32 = vector.broadcast %cst_22 : f32 to vector<8x512xf32>
    %33 = arith.maximumf %31, %32 : vector<8x512xf32>
    %c0_23 = arith.constant 0 : index
    %c0_24 = arith.constant 0 : index
    %34 = vector.load %arg9[%c0_23, %c0_24] : memref<512x256xf32, #tpu.memory_space<vmem>>, vector<512x256xf32>
    %cst_25 = arith.constant dense<0.000000e+00> : vector<8x256xf32>
    %35 = tpu.matmul %33, %34, %cst_25 {dimension_numbers = #tpu.dot_dimension_numbers<[1], [0], [0], [1], [0, 0, 1, 1], [], []>} : vector<8x512xf32>, vector<512x256xf32>, vector<8x256xf32> -> vector<8x256xf32>
    %c0_26 = arith.constant 0 : index
    %c0_27 = arith.constant 0 : index
    %36 = vector.load %arg10[%c0_26, %c0_27] : memref<1x256xf32, #tpu.memory_space<vmem>>, vector<1x256xf32>
    %37 = vector.broadcast %36 : vector<1x256xf32> to vector<8x256xf32>
    %38 = arith.addf %35, %37 : vector<8x256xf32>
    %39 = arith.negf %38 : vector<8x256xf32>
    %40 = math.exp %39 : vector<8x256xf32>
    %cst_28 = arith.constant 1.000000e+00 : f32
    %41 = vector.broadcast %cst_28 : f32 to vector<8x256xf32>
    %42 = arith.addf %41, %40 : vector<8x256xf32>
    %43 = arith.divf %41, %42 : vector<8x256xf32>
    %c0_29 = arith.constant 0 : index
    %c0_30 = arith.constant 0 : index
    %44 = vector.load %arg12[%c0_29, %c0_30] : memref<8x256xf32, #tpu.memory_space<vmem>>, vector<8x256xf32>
    tpu.vector_store %arg12[%c0_29, %c0_30], %43 {strides = array<i32>} : memref<8x256xf32, #tpu.memory_space<vmem>>, vector<8x256xf32>,
    return
  }
  func.func @transform_0(%arg0: i32) -> (i32, i32) {
    %c0_i32 = arith.constant 0 : i32
    %c0_i32_0 = arith.constant 0 : i32
    return %arg0, %c0_i32 : i32, i32
  }
  func.func @transform_1(%arg0: i32) -> (i32, i32) {
    %c0_i32 = arith.constant 0 : i32
    %c0_i32_0 = arith.constant 0 : i32
    return %arg0, %c0_i32 : i32, i32
  }
  func.func @transform_2(%arg0: i32) -> (i32, i32) {
    %c0_i32 = arith.constant 0 : i32
    %c0_i32_0 = arith.constant 0 : i32
    %c0_i32_1 = arith.constant 0 : i32
    return %c0_i32, %c0_i32_0 : i32, i32
  }
  func.func @transform_3(%arg0: i32) -> (i32, i32) {
    %c0_i32 = arith.constant 0 : i32
    %c0_i32_0 = arith.constant 0 : i32
    %c0_i32_1 = arith.constant 0 : i32
    return %c0_i32, %c0_i32_0 : i32, i32
  }
  func.func @transform_4(%arg0: i32) -> (i32, i32) {
    %c0_i32 = arith.constant 0 : i32
    %c0_i32_0 = arith.constant 0 : i32
    %c0_i32_1 = arith.constant 0 : i32
    return %c0_i32, %c0_i32_0 : i32, i32
  }
  func.func @transform_5(%arg0: i32) -> (i32, i32) {
    %c0_i32 = arith.constant 0 : i32
    %c0_i32_0 = arith.constant 0 : i32
    %c0_i32_1 = arith.constant 0 : i32
    return %c0_i32, %c0_i32_0 : i32, i32
  }
  func.func @transform_6(%arg0: i32) -> (i32, i32) {
    %c0_i32 = arith.constant 0 : i32
    %c0_i32_0 = arith.constant 0 : i32
    %c0_i32_1 = arith.constant 0 : i32
    return %c0_i32, %c0_i32_0 : i32, i32
  }
  func.func @transform_7(%arg0: i32) -> (i32, i32) {
    %c0_i32 = arith.constant 0 : i32
    %c0_i32_0 = arith.constant 0 : i32
    %c0_i32_1 = arith.constant 0 : i32
    return %c0_i32, %c0_i32_0 : i32, i32
  }
  func.func @transform_8(%arg0: i32) -> (i32, i32) {
    %c0_i32 = arith.constant 0 : i32
    %c0_i32_0 = arith.constant 0 : i32
    %c0_i32_1 = arith.constant 0 : i32
    return %c0_i32, %c0_i32_0 : i32, i32
  }
  func.func @transform_9(%arg0: i32) -> (i32, i32) {
    %c0_i32 = arith.constant 0 : i32
    %c0_i32_0 = arith.constant 0 : i32
    %c0_i32_1 = arith.constant 0 : i32
    return %c0_i32, %c0_i32_0 : i32, i32
  }
  func.func @transform_10(%arg0: i32) -> (i32, i32) {
    %c0_i32 = arith.constant 0 : i32
    %c0_i32_0 = arith.constant 0 : i32
    return %arg0, %c0_i32 : i32, i32
  }
  func.func @transform_11(%arg0: i32) -> (i32, i32) {
    %c0_i32 = arith.constant 0 : i32
    %c0_i32_0 = arith.constant 0 : i32
    return %arg0, %c0_i32 : i32, i32
  }
}

</mosaic_0001>

<bundles_post_ra>
// kernel: tpu_custom_call.1
= control target key start
LH: loop header
LB: loop body
LE: loop exit
PB: predicated region body
PF: predicated region fallthrough
CT: control target
= control target key end

     0   :  { %17 = vsyncpa [#allocation3], 0  ;;  %s2242_s0 = inlined_call_operand.hbm [shape: f32[8,32], index: 0, kind: input, shape index: {}]   ;;  %s2243_s1 = inlined_call_operand.hbm [shape: f32[8,32], index: 1, kind: input, shape index: {}]   ;;  %s2244_s2 = inlined_call_operand.hbm [shape: f32[32,64], index: 2, kind: input, shape index: {}]   ;;  %s2245_s3 = inlined_call_operand.vmem [shape: f32[1,64], index: 3, kind: input, shape index: {}]   ;;  %s2246_s4 = inlined_call_operand.hbm [shape: f32[32,512], index: 4, kind: input, shape index: {}]   ;;  %s2247_s5 = inlined_call_operand.vmem [shape: f32[1,512], index: 5, kind: input, shape index: {}]   ;;  %s2248_s6 = inlined_call_operand.hbm [shape: f32[512,512], index: 6, kind: input, shape index: {}]   ;;  %s2249_s7 = inlined_call_operand.vmem [shape: f32[1,512], index: 7, kind: input, shape index: {}]   ;;  %s2250_s8 = inlined_call_operand.hbm [shape: f32[512,256], index: 8, kind: input, shape index: {}]   ;;  %s2251_s9 = inlined_call_operand.vmem [shape: f32[1,256], index: 9, kind: input, shape index: {}]   ;;  %s2252_s10 = inlined_call_operand.hbm [shape: f32[8,64], index: 10, kind: output, shape index: {0}]   ;;  %s2253_s11 = inlined_call_operand.hbm [shape: f32[8,256], index: 11, kind: output, shape index: {1}]  }
   0x1   :  { %18 = vsyncpa [#allocation6], 0 }
   0x2   :  { %19 = vsyncpa [#allocation9], 0 }
   0x3   :  { %20 = vsyncpa [#allocation12], 0 }
   0x4   :  { %21 = vsyncpa [#allocation4], 0 }
   0x5   :  { %22 = vsyncpa [#allocation15], 0  ;;  %s1963_s17 = smov [#allocation5]   ;;  %s1964_s19 = smov [#allocation8]  }
   0x6   :  { %s39_s18 = sshll.u32 %s1963_s17, 4  ;;  %s62_s20 = sshll.u32 %s1964_s19, 4  ;;  %s40_s18 = int_to_ptr.vmem [resolvable:$true] %s39_s18  ;;  %s2040_s20 = int_to_ptr.vmem [resolvable:$true] %s62_s20 }
   0x7   :  { %s1775_s23 = scalar_lea.hbm %s2243_s1, 128 }
   0x8   :  { %p1776_p0 = scmp.ne.s32.totalorder %s2243_s1, %s1775_s23  ;;  %p1779_p1 = scmp.lt.u32.totalorder %s1775_s23, %s2243_s1 }
   0xa   :  { %p1781_p2 = pnand %p1779_p1, %p1776_p0 }
   0xc   :  { %1784 = shalt.err (!%p1781_p2)
}
   0xd   :  { %s1785_s28 = scalar_lea.vmem %s40_s18, 128  ;;  %p1790_p4 = scmp.lt.s32.totalorder %s40_s18, %s40_s18 }
   0xe   :  { %p1786_p3 = scmp.ne.s32.totalorder %s40_s18, %s1785_s28  ;;  %p1791_p5 = scmp.lt.s32.totalorder %s1785_s28, %s1785_s28 }
  0x10   :  { %p1792_p6 = por %p1791_p5, %p1790_p4 }
  0x12   :  { %p1793_p7 = pnand %p1792_p6, %p1786_p3 }
  0x14   :  { %1796 = shalt.err (!%p1793_p7)
}
  0x15   :  { %42 = dma.hbm_to_vmem [thread:$0]  %s2243_s1, 128, %s40_s18, [#allocation6]  }
  0x16   :  { %s1797_s14 = scalar_lea.hbm %s2246_s4, 2048 }
  0x17   :  { %p1798_p8 = scmp.ne.s32.totalorder %s2246_s4, %s1797_s14  ;;  %p1801_p9 = scmp.lt.u32.totalorder %s1797_s14, %s2246_s4 }
  0x19   :  { %p1803_p10 = pnand %p1801_p9, %p1798_p8 }
  0x1b   :  { %1806 = shalt.err (!%p1803_p10)
}
  0x1c   :  { %s1807_s21 = scalar_lea.vmem %s2040_s20, 2048  ;;  %p1812_p12 = scmp.lt.s32.totalorder %s2040_s20, %s2040_s20 }
  0x1d   :  { %p1808_p11 = scmp.ne.s32.totalorder %s2040_s20, %s1807_s21  ;;  %p1813_p13 = scmp.lt.s32.totalorder %s1807_s21, %s1807_s21 }
  0x1f   :  { %p1814_p0 = por %p1813_p13, %p1812_p12 }
  0x21   :  { %p1815_p1 = pnand %p1814_p0, %p1808_p11 }
  0x23   :  { %1818 = shalt.err (!%p1815_p1)
}
  0x24   :  { %s1965_s1 = smov 512   ;;  %s1966_s18 = smov 32  }
  0x25   :  { %68 = dma.hbm_to_vmem [thread:$0]  %s2246_s4, 2048, %s2040_s20, [#allocation9], %s1965_s1, %s1965_s1, %s1966_s18  }
  0x26   :  { %s1967_s24 = smov [#allocation2]   ;;  %s1968_s26 = smov [#allocation7]  }
  0x27   :  { %s29_s25 = sshll.u32 %s1967_s24, 4  ;;  %s48_s27 = sshll.u32 %s1968_s26, 4  ;;  %s30_s25 = int_to_ptr.vmem [resolvable:$true] %s29_s25  ;;  %s2074_s27 = int_to_ptr.vmem [resolvable:$true] %s48_s27 }
  0x28   :  { %s1819_s30 = scalar_lea.hbm %s2242_s0, 128 }
  0x29   :  { %p1820_p2 = scmp.ne.s32.totalorder %s2242_s0, %s1819_s30  ;;  %p1823_p3 = scmp.lt.u32.totalorder %s1819_s30, %s2242_s0 }
  0x2b   :  { %p1825_p4 = pnand %p1823_p3, %p1820_p2 }
  0x2d   :  { %1828 = shalt.err (!%p1825_p4)
}
  0x2e   :  { %s1829_s4 = scalar_lea.vmem %s30_s25, 128  ;;  %p1834_p6 = scmp.lt.s32.totalorder %s30_s25, %s30_s25 }
  0x2f   :  { %p1830_p5 = scmp.ne.s32.totalorder %s30_s25, %s1829_s4  ;;  %p1835_p7 = scmp.lt.s32.totalorder %s1829_s4, %s1829_s4 }
  0x31   :  { %p1836_p8 = por %p1835_p7, %p1834_p6 }
  0x33   :  { %p1837_p9 = pnand %p1836_p8, %p1830_p5 }
  0x35   :  { %1840 = shalt.err (!%p1837_p9)
}
  0x36   :  { %32 = dma.hbm_to_vmem [thread:$0]  %s2242_s0, 128, %s30_s25, [#allocation3]  }
  0x37   :  { %s1841_s21 = scalar_lea.hbm %s2244_s2, 512 }
  0x38   :  { %p1842_p10 = scmp.ne.s32.totalorder %s2244_s2, %s1841_s21  ;;  %p1845_p11 = scmp.lt.u32.totalorder %s1841_s21, %s2244_s2 }
  0x3a   :  { %p1847_p12 = pnand %p1845_p11, %p1842_p10 }
  0x3c   :  { %1850 = shalt.err (!%p1847_p12)
}
  0x3d   :  { %s1851_s28 = scalar_lea.vmem %s2074_s27, 512  ;;  %p1856_p0 = scmp.lt.s32.totalorder %s2074_s27, %s2074_s27 }
  0x3e   :  { %p1852_p13 = scmp.ne.s32.totalorder %s2074_s27, %s1851_s28  ;;  %p1857_p1 = scmp.lt.s32.totalorder %s1851_s28, %s1851_s28 }
  0x40   :  { %p1858_p2 = por %p1857_p1, %p1856_p0 }
  0x42   :  { %p1859_p3 = pnand %p1858_p2, %p1852_p13 }
  0x44   :  { %1862 = shalt.err (!%p1859_p3)
}
  0x45   :  { %s1969_s0 = smov 128   ;;  %s1970_s25 = smov 8  }
  0x46   :  { %54 = dma.hbm_to_vmem [thread:$0]  %s2244_s2, 512, %s2074_s27, [#allocation6], %s1969_s0, %s1969_s0, %s1970_s25  }
  0x47   :  { %s1971_s12 = smov [#allocation10]   ;;  %s1972_s14 = smov [#allocation11]  }
  0x48   :  { %s76_s13 = sshll.u32 %s1971_s12, 4  ;;  %s90_s15 = sshll.u32 %s1972_s14, 4  ;;  %s77_s13 = int_to_ptr.vmem [resolvable:$true] %s76_s13  ;;  %s2105_s15 = int_to_ptr.vmem [resolvable:$true] %s90_s15 }
  0x49   :  { %s1863_s16 = scalar_lea.hbm %s2248_s6, 32768 }
  0x4a   :  { %p1864_p4 = scmp.ne.s32.totalorder %s2248_s6, %s1863_s16  ;;  %p1867_p5 = scmp.lt.u32.totalorder %s1863_s16, %s2248_s6 }
  0x4c   :  { %p1869_p6 = pnand %p1867_p5, %p1864_p4 }
  0x4e   :  { %1872 = shalt.err (!%p1869_p6)
}
  0x4f   :  { %s1873_s2 = scalar_lea.vmem %s77_s13, 32768  ;;  %p1878_p8 = scmp.lt.s32.totalorder %s77_s13, %s77_s13 }
  0x50   :  { %p1874_p7 = scmp.ne.s32.totalorder %s77_s13, %s1873_s2  ;;  %p1879_p9 = scmp.lt.s32.totalorder %s1873_s2, %s1873_s2 }
  0x52   :  { %p1880_p10 = por %p1879_p9, %p1878_p8 }
  0x54   :  { %p1881_p11 = pnand %p1880_p10, %p1874_p7 }
  0x56   :  { %1884 = shalt.err (!%p1881_p11)
}
  0x57   :  { %82 = dma.hbm_to_vmem [thread:$0]  %s2248_s6, 32768, %s77_s13, [#allocation9], %s1965_s1, %s1965_s1, %s1966_s18  }
  0x58   :  { %s1885_s28 = scalar_lea.hbm %s2250_s8, 16384 }
  0x59   :  { %p1886_p12 = scmp.ne.s32.totalorder %s2250_s8, %s1885_s28  ;;  %p1889_p13 = scmp.lt.u32.totalorder %s1885_s28, %s2250_s8 }
  0x5b   :  { %p1891_p0 = pnand %p1889_p13, %p1886_p12 }
  0x5d   :  { %1894 = shalt.err (!%p1891_p0)
}
  0x5e   :  { %s1895_s12 = scalar_lea.vmem %s2105_s15, 16384  ;;  %p1900_p2 = scmp.lt.s32.totalorder %s2105_s15, %s2105_s15 }
  0x5f   :  { %p1896_p1 = scmp.ne.s32.totalorder %s2105_s15, %s1895_s12  ;;  %p1901_p3 = scmp.lt.s32.totalorder %s1895_s12, %s1895_s12 }
  0x61   :  { %p1902_p4 = por %p1901_p3, %p1900_p2 }
  0x63   :  { %p1903_p5 = pnand %p1902_p4, %p1896_p1 }
  0x65   :  { %1906 = shalt.err (!%p1903_p5)
}
  0x66   :  { %s1973_s6 = smov 256   ;;  %s1974_s1 = smov 16  }
  0x67   :  { %96 = dma.hbm_to_vmem [thread:$0]  %s2250_s8, 16384, %s2105_s15, [#allocation12], %s1973_s6, %s1973_s6, %s1974_s1  }
  0x68   :  { %1951 = dma.done.wait [#allocation3], 128  }
  0x69   :  { %1952 = vsyncadd [#allocation3], 4294967168 }
  0x6a   :  { %1953 = dma.done.wait [#allocation6], 640  }
  0x6b   :  { %1954 = vsyncadd [#allocation6], 4294966656 }
  0x6c   :  { %1955 = dma.done.wait [#allocation9], 34816  }
  0x6d   :  { %1956 = vsyncadd [#allocation9], 4294932480 }
  0x6e   :  { %1957 = dma.done.wait [#allocation12], 16384  }
  0x6f   :  { %1958 = vsyncadd [#allocation12], 4294950912  ;;  %v1975_v0 = vmov 0.0|0.0   ;;  %vm1976_vm0 = vmmov 0   ;;  %v1977_v1 = vmov 0.0   ;;  %v118_v2 = vld [vmem:[#allocation7] sm:$0xff] }
  0x70   :  { %1328 = vmatprep.subr.bf16.mxu0 %v1975_v0  ;;  %1325 = vmatprep.mubr.msk.f32.mxu0 %vm1976_vm0, %v1977_v1  ;;  %v119_v3 = vld [vmem:[#allocation7 + $0x8] sm:$0xff]  ;;  %v225_v7 = vld [vmem:[#allocation8] sm:$0xff]  ;;  %v120_v11 = vld [vmem:[#allocation7 + $0x10] sm:$0xff]  ;;  %vm129_vm1 = vcmask 261120   ;;  %vm222_vm4 = vcmask 523264  }
  0x71   :  { %330 = vmatprep.mubr.f32.mxu1 %v1977_v1  ;;  %v226_v4 = vld [vmem:[#allocation8 + $0x8] sm:$0xff]  ;;  %v1329_v5 = vpack.c.bf16 %v119_v3, %v118_v2  ;;  %v229_v8 = vld [vmem:[#allocation8 + $0x20] sm:$0xff]  ;;  %v121_v12 = vld [vmem:[#allocation7 + $0x18] sm:$0xff] }
  0x72   :  { %v230_v6 = vld [vmem:[#allocation8 + $0x28] sm:$0xff]  ;;  %v1336_v10 = vpack.c.bf16 %v229_v8, %v225_v7  ;;  %v1332_v14 = vpack.c.bf16 %v121_v12, %v120_v11  ;;  %v233_v16 = vld [vmem:[#allocation8 + $0x40] sm:$0xff]  ;;  %v228_v19 = vld [vmem:[#allocation8 + $0x18] sm:$0xff] }
  0x73   :  { %v1334_v9 = vpack.c.bf16 %v230_v6, %v226_v4  ;;  %v234_v13 = vld [vmem:[#allocation8 + $0x48] sm:$0xff]  ;;  %1330 = vmatpush3.bf16.msra.mxu0 %v1329_v5  ;;  %v237_v17 = vld [vmem:[#allocation8 + $0x60] sm:$0xff]  ;;  %v232_v20 = vld [vmem:[#allocation8 + $0x38] sm:$0xff] }
  0x74   :  { %v238_v15 = vld [vmem:[#allocation8 + $0x68] sm:$0xff]  ;;  %1331 = vmatprep.subr.bf16.mxu0 %v1975_v0  ;;  %v1340_v21 = vpack.c.bf16 %v237_v17, %v233_v16  ;;  %v1342_v22 = vpack.c.bf16 %v232_v20, %v228_v19  ;;  %v227_v23 = vld [vmem:[#allocation8 + $0x10] sm:$0xff]  ;;  %v236_v25 = vld [vmem:[#allocation8 + $0x58] sm:$0xff] }
  0x75   :  { %1335 = vmatprep.subr.bf16.mxu1 %v1334_v9  ;;  %v1338_v18 = vpack.c.bf16 %v238_v15, %v234_v13  ;;  %v231_v24 = vld [vmem:[#allocation8 + $0x30] sm:$0xff]  ;;  %v240_v26 = vld [vmem:[#allocation8 + $0x78] sm:$0xff]  ;;  %v413_v33 = vld [vmem:[#allocation10 + $0x8] sm:$0xff] }
  0x76   :  { %1337 = vmatpush1.bf16.msra.mxu1 %v1336_v10  ;;  %v117_v27 = vld [vmem:[#allocation2] sm:$0xff]  ;;  %v1344_v28 = vpack.c.bf16 %v231_v24, %v227_v23  ;;  %v1346_v29 = vpack.c.bf16 %v240_v26, %v236_v25  ;;  %v224_v32 = vld [vmem:[#allocation5] sm:$0xff]  ;;  %v417_v34 = vld [vmem:[#allocation10 + $0x28] sm:$0xff] }
  0x77   :  { %1339 = vmatprep.subr.bf16.mxu1 %v1338_v18  ;;  %1333 = vmatpush3.bf16.msra.mxu0 %v1332_v14  ;;  %v235_v30 = vld [vmem:[#allocation8 + $0x50] sm:$0xff]  ;;  %v541_v35 = vld [vmem:[#allocation10 + $0x408] sm:$0xff]  ;;  %v412_v37 = vld [vmem:[#allocation10] sm:$0xff]  ;;  %v1350_v40 = vpack.c.bf16 %v417_v34, %v413_v33 }
  0x78   :  { %1343 = vmatprep.subr.bf16.mxu0 %v1342_v22  ;;  %v239_v31 = vld [vmem:[#allocation8 + $0x70] sm:$0xff]  ;;  %v416_v38 = vld [vmem:[#allocation10 + $0x20] sm:$0xff]  ;;  %v545_v39 = vld [vmem:[#allocation10 + $0x428] sm:$0xff] }
  0x79   :  { %v1348_v36 = vpack.c.bf16 %v239_v31, %v235_v30  ;;  %v421_v41 = vld [vmem:[#allocation10 + $0x48] sm:$0xff]  ;;  %v1414_v42 = vpack.c.bf16 %v545_v39, %v541_v35  ;;  %v540_v43 = vld [vmem:[#allocation10 + $0x400] sm:$0xff]  ;;  %v1352_v51 = vpack.c.bf16 %v416_v38, %v412_v37 }
  0x7a   :  { %1341 = vmatpush1.bf16.msra.mxu1 %v1340_v21  ;;  %1326 = vmatmul.mubr.msk.f32.vlgmr.msra.gmra.mrb[0].mxu0 %vm129_vm1, %v117_v27  ;;  %v544_v44 = vld [vmem:[#allocation10 + $0x420] sm:$0xff]  ;;  %v425_v45 = vld [vmem:[#allocation10 + $0x68] sm:$0xff] }
  0x7b   :  { %1345 = vmatpush1.bf16.msra.mxu0 %v1344_v28  ;;  %401 = vmatprep.mubr.f32.mxu0 %v1977_v1  ;;  %v1416_v46 = vpack.c.bf16 %v544_v44, %v540_v43  ;;  %v549_v47 = vld [vmem:[#allocation10 + $0x448] sm:$0xff]  ;;  %v548_v50 = vld [vmem:[#allocation10 + $0x440] sm:$0xff]  ;;  %v1354_v55 = vpack.c.bf16 %v425_v45, %v421_v41 }
  0x7c   :  { %1347 = vmatprep.subr.bf16.mxu0 %v1346_v29  ;;  %v553_v48 = vld [vmem:[#allocation10 + $0x468] sm:$0xff]  ;;  %1415 = vmatprep.subr.bf16.mxu1 %v1414_v42  ;;  %v420_v52 = vld [vmem:[#allocation10 + $0x40] sm:$0xff] }
  0x7d   :  { %1308 = vmatmul.mubr.msk.f32.vlgmr.msra.gmra.mrb[0].mxu1 %vm129_vm1, %v224_v32  ;;  %v1418_v49 = vpack.c.bf16 %v553_v48, %v549_v47  ;;  %v424_v53 = vld [vmem:[#allocation10 + $0x60] sm:$0xff]  ;;  %v429_v56 = vld [vmem:[#allocation10 + $0x88] sm:$0xff] }
  0x7e   :  { %1417 = vmatpush1.bf16.msra.mxu1 %v1416_v46  ;;  %v552_v54 = vld [vmem:[#allocation10 + $0x460] sm:$0xff]  ;;  %v557_v58 = vld [vmem:[#allocation10 + $0x488] sm:$0xff]  ;;  %v1356_v1 = vpack.c.bf16 %v424_v53, %v420_v52 }
  0x7f   :  { %1349 = vmatpush1.bf16.msra.mxu0 %v1348_v36  ;;  %1419 = vmatprep.subr.bf16.mxu1 %v1418_v49  ;;  %v1420_v57 = vpack.c.bf16 %v552_v54, %v548_v50  ;;  %v561_v59 = vld [vmem:[#allocation10 + $0x4a8] sm:$0xff]  ;;  %v556_v62 = vld [vmem:[#allocation10 + $0x480] sm:$0xff] }
  0x80   :  { %1351 = vmatprep.subr.bf16.mxu0 %v1350_v40  ;;  %v433_v60 = vld [vmem:[#allocation10 + $0xa8] sm:$0xff]  ;;  %v1422_v61 = vpack.c.bf16 %v561_v59, %v557_v58  ;;  %v560_v63 = vld [vmem:[#allocation10 + $0x4a0] sm:$0xff] }
  0x81   :  { %v565_v0 = vld [vmem:[#allocation10 + $0x4c8] sm:$0xff]  ;;  %v428_v2 = vld [vmem:[#allocation10 + $0x80] sm:$0xff]  ;;  %v1424_v4 = vpack.c.bf16 %v560_v63, %v556_v62  ;;  %v1358_v6 = vpack.c.bf16 %v433_v60, %v429_v56 }
  0x82   :  { %1309 = vmatmul.mubr.msk.f32.vlgmr.msra.gmra.mrb[2].mxu0 %vm129_vm1, %v224_v32  ;;  %v432_v3 = vld [vmem:[#allocation10 + $0xa0] sm:$0xff]  ;;  %1421 = vmatpush1.bf16.msra.mxu1 %v1420_v57  ;;  %v569_v5 = vld [vmem:[#allocation10 + $0x4e8] sm:$0xff] }
  0x83   :  { %1353 = vmatpush1.bf16.msra.mxu0 %v1352_v51  ;;  %v437_v7 = vld [vmem:[#allocation10 + $0xc8] sm:$0xff]  ;;  %1423 = vmatprep.subr.bf16.mxu1 %v1422_v61  ;;  %v1426_v8 = vpack.c.bf16 %v569_v5, %v565_v0  ;;  %v564_v9 = vld [vmem:[#allocation10 + $0x4c0] sm:$0xff]  ;;  %v1360_v14 = vpack.c.bf16 %v432_v3, %v428_v2 }
  0x84   :  { %1355 = vmatprep.subr.bf16.mxu0 %v1354_v55  ;;  %v568_v10 = vld [vmem:[#allocation10 + $0x4e0] sm:$0xff]  ;;  %v441_v11 = vld [vmem:[#allocation10 + $0xe8] sm:$0xff] }
  0x85   :  { %v573_v12 = vld [vmem:[#allocation10 + $0x508] sm:$0xff]  ;;  %v436_v15 = vld [vmem:[#allocation10 + $0xc0] sm:$0xff]  ;;  %v1428_v17 = vpack.c.bf16 %v568_v10, %v564_v9  ;;  %v1362_v18 = vpack.c.bf16 %v441_v11, %v437_v7 }
  0x86   :  { %v577_v13 = vld [vmem:[#allocation10 + $0x528] sm:$0xff]  ;;  %v440_v16 = vld [vmem:[#allocation10 + $0xe0] sm:$0xff]  ;;  %1425 = vmatpush1.bf16.msra.mxu1 %v1424_v4 }
  0x87   :  { %1357 = vmatpush1.bf16.msra.mxu0 %v1356_v1  ;;  %v445_v19 = vld [vmem:[#allocation10 + $0x108] sm:$0xff]  ;;  %1427 = vmatprep.subr.bf16.mxu1 %v1426_v8  ;;  %v1430_v20 = vpack.c.bf16 %v577_v13, %v573_v12  ;;  %v572_v21 = vld [vmem:[#allocation10 + $0x500] sm:$0xff]  ;;  %v1364_v26 = vpack.c.bf16 %v440_v16, %v436_v15 }
  0x88   :  { %1359 = vmatprep.subr.bf16.mxu0 %v1358_v6  ;;  %v576_v22 = vld [vmem:[#allocation10 + $0x520] sm:$0xff]  ;;  %v449_v23 = vld [vmem:[#allocation10 + $0x128] sm:$0xff] }
  0x89   :  { %v581_v24 = vld [vmem:[#allocation10 + $0x548] sm:$0xff]  ;;  %v444_v27 = vld [vmem:[#allocation10 + $0x100] sm:$0xff]  ;;  %v1432_v29 = vpack.c.bf16 %v576_v22, %v572_v21  ;;  %v1366_v30 = vpack.c.bf16 %v449_v23, %v445_v19 }
  0x8a   :  { %v585_v25 = vld [vmem:[#allocation10 + $0x568] sm:$0xff]  ;;  %v448_v28 = vld [vmem:[#allocation10 + $0x120] sm:$0xff]  ;;  %1429 = vmatpush1.bf16.msra.mxu1 %v1428_v17 }
  0x8b   :  { %1361 = vmatpush1.bf16.msra.mxu0 %v1360_v14  ;;  %v453_v31 = vld [vmem:[#allocation10 + $0x148] sm:$0xff]  ;;  %1431 = vmatprep.subr.bf16.mxu1 %v1430_v20  ;;  %v1434_v32 = vpack.c.bf16 %v585_v25, %v581_v24  ;;  %v580_v33 = vld [vmem:[#allocation10 + $0x540] sm:$0xff]  ;;  %v1368_v38 = vpack.c.bf16 %v448_v28, %v444_v27 }
  0x8c   :  { %1363 = vmatprep.subr.bf16.mxu0 %v1362_v18  ;;  %v584_v34 = vld [vmem:[#allocation10 + $0x560] sm:$0xff]  ;;  %v457_v35 = vld [vmem:[#allocation10 + $0x168] sm:$0xff] }
  0x8d   :  { %v589_v36 = vld [vmem:[#allocation10 + $0x588] sm:$0xff]  ;;  %v452_v39 = vld [vmem:[#allocation10 + $0x140] sm:$0xff]  ;;  %v1436_v41 = vpack.c.bf16 %v584_v34, %v580_v33  ;;  %v1370_v42 = vpack.c.bf16 %v457_v35, %v453_v31 }
  0x8e   :  { %v593_v37 = vld [vmem:[#allocation10 + $0x5a8] sm:$0xff]  ;;  %v456_v40 = vld [vmem:[#allocation10 + $0x160] sm:$0xff]  ;;  %1433 = vmatpush1.bf16.msra.mxu1 %v1432_v29 }
  0x8f   :  { %1365 = vmatpush1.bf16.msra.mxu0 %v1364_v26  ;;  %v461_v43 = vld [vmem:[#allocation10 + $0x188] sm:$0xff]  ;;  %1435 = vmatprep.subr.bf16.mxu1 %v1434_v32  ;;  %v1438_v44 = vpack.c.bf16 %v593_v37, %v589_v36  ;;  %v588_v45 = vld [vmem:[#allocation10 + $0x580] sm:$0xff]  ;;  %v1372_v50 = vpack.c.bf16 %v456_v40, %v452_v39 }
  0x90   :  { %1367 = vmatprep.subr.bf16.mxu0 %v1366_v30  ;;  %v592_v46 = vld [vmem:[#allocation10 + $0x5a0] sm:$0xff]  ;;  %v465_v47 = vld [vmem:[#allocation10 + $0x1a8] sm:$0xff] }
  0x91   :  { %v597_v48 = vld [vmem:[#allocation10 + $0x5c8] sm:$0xff]  ;;  %v460_v51 = vld [vmem:[#allocation10 + $0x180] sm:$0xff]  ;;  %v1440_v53 = vpack.c.bf16 %v592_v46, %v588_v45  ;;  %v1374_v54 = vpack.c.bf16 %v465_v47, %v461_v43 }
  0x92   :  { %v601_v49 = vld [vmem:[#allocation10 + $0x5e8] sm:$0xff]  ;;  %v464_v52 = vld [vmem:[#allocation10 + $0x1a0] sm:$0xff]  ;;  %1437 = vmatpush1.bf16.msra.mxu1 %v1436_v41 }
  0x93   :  { %1369 = vmatpush1.bf16.msra.mxu0 %v1368_v38  ;;  %v469_v55 = vld [vmem:[#allocation10 + $0x1c8] sm:$0xff]  ;;  %1439 = vmatprep.subr.bf16.mxu1 %v1438_v44  ;;  %v1442_v56 = vpack.c.bf16 %v601_v49, %v597_v48  ;;  %v596_v57 = vld [vmem:[#allocation10 + $0x5c0] sm:$0xff]  ;;  %v1376_v62 = vpack.c.bf16 %v464_v52, %v460_v51 }
  0x94   :  { %1371 = vmatprep.subr.bf16.mxu0 %v1370_v42  ;;  %v600_v58 = vld [vmem:[#allocation10 + $0x5e0] sm:$0xff]  ;;  %v473_v59 = vld [vmem:[#allocation10 + $0x1e8] sm:$0xff] }
  0x95   :  { %v605_v60 = vld [vmem:[#allocation10 + $0x608] sm:$0xff]  ;;  %v468_v63 = vld [vmem:[#allocation10 + $0x1c0] sm:$0xff]  ;;  %v1444_v1 = vpack.c.bf16 %v600_v58, %v596_v57  ;;  %v1378_v2 = vpack.c.bf16 %v473_v59, %v469_v55 }
  0x96   :  { %v609_v61 = vld [vmem:[#allocation10 + $0x628] sm:$0xff]  ;;  %v472_v0 = vld [vmem:[#allocation10 + $0x1e0] sm:$0xff]  ;;  %1441 = vmatpush1.bf16.msra.mxu1 %v1440_v53 }
  0x97   :  { %1373 = vmatpush1.bf16.msra.mxu0 %v1372_v50  ;;  %v477_v3 = vld [vmem:[#allocation10 + $0x208] sm:$0xff]  ;;  %1443 = vmatprep.subr.bf16.mxu1 %v1442_v56  ;;  %v1446_v4 = vpack.c.bf16 %v609_v61, %v605_v60  ;;  %v604_v5 = vld [vmem:[#allocation10 + $0x600] sm:$0xff]  ;;  %v1380_v10 = vpack.c.bf16 %v472_v0, %v468_v63 }
  0x98   :  { %1375 = vmatprep.subr.bf16.mxu0 %v1374_v54  ;;  %v608_v6 = vld [vmem:[#allocation10 + $0x620] sm:$0xff]  ;;  %v481_v7 = vld [vmem:[#allocation10 + $0x228] sm:$0xff] }
  0x99   :  { %v613_v8 = vld [vmem:[#allocation10 + $0x648] sm:$0xff]  ;;  %v476_v11 = vld [vmem:[#allocation10 + $0x200] sm:$0xff]  ;;  %v1448_v13 = vpack.c.bf16 %v608_v6, %v604_v5  ;;  %v1382_v14 = vpack.c.bf16 %v481_v7, %v477_v3 }
  0x9a   :  { %v617_v9 = vld [vmem:[#allocation10 + $0x668] sm:$0xff]  ;;  %v480_v12 = vld [vmem:[#allocation10 + $0x220] sm:$0xff]  ;;  %1445 = vmatpush1.bf16.msra.mxu1 %v1444_v1 }
  0x9b   :  { %1377 = vmatpush1.bf16.msra.mxu0 %v1376_v62  ;;  %v485_v15 = vld [vmem:[#allocation10 + $0x248] sm:$0xff]  ;;  %1447 = vmatprep.subr.bf16.mxu1 %v1446_v4  ;;  %v1450_v16 = vpack.c.bf16 %v617_v9, %v613_v8  ;;  %v612_v17 = vld [vmem:[#allocation10 + $0x640] sm:$0xff]  ;;  %v1384_v22 = vpack.c.bf16 %v480_v12, %v476_v11 }
  0x9c   :  { %1379 = vmatprep.subr.bf16.mxu0 %v1378_v2  ;;  %v616_v18 = vld [vmem:[#allocation10 + $0x660] sm:$0xff]  ;;  %v489_v19 = vld [vmem:[#allocation10 + $0x268] sm:$0xff] }
  0x9d   :  { %v621_v20 = vld [vmem:[#allocation10 + $0x688] sm:$0xff]  ;;  %v484_v23 = vld [vmem:[#allocation10 + $0x240] sm:$0xff]  ;;  %v1452_v25 = vpack.c.bf16 %v616_v18, %v612_v17  ;;  %v1386_v26 = vpack.c.bf16 %v489_v19, %v485_v15 }
  0x9e   :  { %v625_v21 = vld [vmem:[#allocation10 + $0x6a8] sm:$0xff]  ;;  %v488_v24 = vld [vmem:[#allocation10 + $0x260] sm:$0xff]  ;;  %1449 = vmatpush1.bf16.msra.mxu1 %v1448_v13 }
  0x9f   :  { %1381 = vmatpush1.bf16.msra.mxu0 %v1380_v10  ;;  %v493_v27 = vld [vmem:[#allocation10 + $0x288] sm:$0xff]  ;;  %1451 = vmatprep.subr.bf16.mxu1 %v1450_v16  ;;  %v1454_v28 = vpack.c.bf16 %v625_v21, %v621_v20  ;;  %v620_v29 = vld [vmem:[#allocation10 + $0x680] sm:$0xff]  ;;  %v1388_v34 = vpack.c.bf16 %v488_v24, %v484_v23  ;;  %v415_v24 = vld [vmem:[#allocation10 + $0x18] sm:$0xff] }
  0xa0   :  { %1383 = vmatprep.subr.bf16.mxu0 %v1382_v14  ;;  %v624_v30 = vld [vmem:[#allocation10 + $0x6a0] sm:$0xff]  ;;  %v497_v31 = vld [vmem:[#allocation10 + $0x2a8] sm:$0xff] }
  0xa1   :  { %v629_v32 = vld [vmem:[#allocation10 + $0x6c8] sm:$0xff]  ;;  %v492_v35 = vld [vmem:[#allocation10 + $0x280] sm:$0xff]  ;;  %v1456_v37 = vpack.c.bf16 %v624_v30, %v620_v29  ;;  %v1390_v38 = vpack.c.bf16 %v497_v31, %v493_v27 }
  0xa2   :  { %v633_v33 = vld [vmem:[#allocation10 + $0x6e8] sm:$0xff]  ;;  %v496_v36 = vld [vmem:[#allocation10 + $0x2a0] sm:$0xff]  ;;  %1453 = vmatpush1.bf16.msra.mxu1 %v1452_v25 }
  0xa3   :  { %1385 = vmatpush1.bf16.msra.mxu0 %v1384_v22  ;;  %v501_v39 = vld [vmem:[#allocation10 + $0x2c8] sm:$0xff]  ;;  %1455 = vmatprep.subr.bf16.mxu1 %v1454_v28  ;;  %v1458_v40 = vpack.c.bf16 %v633_v33, %v629_v32  ;;  %v628_v41 = vld [vmem:[#allocation10 + $0x6c0] sm:$0xff]  ;;  %v1392_v46 = vpack.c.bf16 %v496_v36, %v492_v35 }
  0xa4   :  { %1387 = vmatprep.subr.bf16.mxu0 %v1386_v26  ;;  %v632_v42 = vld [vmem:[#allocation10 + $0x6e0] sm:$0xff]  ;;  %v505_v43 = vld [vmem:[#allocation10 + $0x2e8] sm:$0xff]  ;;  %v419_v26 = vld [vmem:[#allocation10 + $0x38] sm:$0xff] }
  0xa5   :  { %v637_v44 = vld [vmem:[#allocation10 + $0x708] sm:$0xff]  ;;  %v500_v47 = vld [vmem:[#allocation10 + $0x2c0] sm:$0xff]  ;;  %v1460_v48 = vpack.c.bf16 %v632_v42, %v628_v41  ;;  %v1394_v49 = vpack.c.bf16 %v505_v43, %v501_v39  ;;  %v1478_v28 = vpack.c.bf16 %v419_v26, %v415_v24  ;;  %v1306_v42 = vld [vmem:[%s2245_s3] ss:$0 sm:$0xff] }
  0xa6   :  { %v641_v45 = vld [vmem:[#allocation10 + $0x728] sm:$0xff]  ;;  %1457 = vmatpush1.bf16.msra.mxu1 %v1456_v37  ;;  %v504_v50 = vld [vmem:[#allocation10 + $0x2e0] sm:$0xff]  ;;  %v218_v37 = vlaneseq  ;;  %v439_v24 = vld [vmem:[#allocation10 + $0xd8] sm:$0xff] }
  0xa7   :  { %1389 = vmatpush1.bf16.msra.mxu0 %v1388_v34  ;;  %1459 = vmatprep.subr.bf16.mxu1 %v1458_v40  ;;  %v1462_v51 = vpack.c.bf16 %v641_v45, %v637_v44  ;;  %v636_v52 = vld [vmem:[#allocation10 + $0x700] sm:$0xff]  ;;  %v509_v54 = vld [vmem:[#allocation10 + $0x308] sm:$0xff]  ;;  %v1396_v56 = vpack.c.bf16 %v504_v50, %v500_v47  ;;  %v241_v40 = vld [vmem:[%s2247_s5] sm:$0xf] }
  0xa8   :  { %1391 = vmatprep.subr.bf16.mxu0 %v1390_v38  ;;  %v640_v53 = vld [vmem:[#allocation10 + $0x720] sm:$0xff]  ;;  %v513_v55 = vld [vmem:[#allocation10 + $0x328] sm:$0xff]  ;;  %v2143_v38 = vshrl.u32 %v218_v37, 7 }
  0xa9   :  { %v1464_v57 = vpack.c.bf16 %v640_v53, %v636_v52  ;;  %v1398_v58 = vpack.c.bf16 %v513_v55, %v509_v54  ;;  %v508_v59 = vld [vmem:[#allocation10 + $0x300] sm:$0xff]  ;;  %v517_v61 = vld [vmem:[#allocation10 + $0x348] sm:$0xff]  ;;  %v414_v54 = vld [vmem:[#allocation10 + $0x10] sm:$0xff] }
  0xaa   :  { %1461 = vmatpush1.bf16.msra.mxu1 %v1460_v48  ;;  %v512_v60 = vld [vmem:[#allocation10 + $0x320] sm:$0xff]  ;;  %v521_v62 = vld [vmem:[#allocation10 + $0x368] sm:$0xff]  ;;  %v2146_v39 = vsub.s32 0, %v2143_v38  ;;  %v2152_v41 = vsub.s32 1, %v2143_v38  ;;  %v253_v48 = vsub.s32 2, %v2143_v38  ;;  %v257_v50 = vsub.s32 3, %v2143_v38 }
  0xab   :  { %1393 = vmatpush1.bf16.msra.mxu0 %v1392_v46  ;;  %1463 = vmatprep.subr.bf16.mxu1 %v1462_v51  ;;  %v1400_v63 = vpack.c.bf16 %v512_v60, %v508_v59  ;;  %v1402_v0 = vpack.c.bf16 %v521_v62, %v517_v61  ;;  %v516_v1 = vld [vmem:[#allocation10 + $0x340] sm:$0xff]  ;;  %v525_v3 = vld [vmem:[#allocation10 + $0x388] sm:$0xff]  ;;  %v418_v55 = vld [vmem:[#allocation10 + $0x30] sm:$0xff] }
  0xac   :  { %1395 = vmatprep.subr.bf16.mxu0 %v1394_v49  ;;  %v520_v2 = vld [vmem:[#allocation10 + $0x360] sm:$0xff]  ;;  %v529_v4 = vld [vmem:[#allocation10 + $0x3a8] sm:$0xff]  ;;  %v246_v43 = vrot.slane %v241_v40, %v2146_v39  ;;  %v250_v44 = vrot.slane %v241_v40, %v2152_v41  ;;  %v254_v60 = vrot.slane %v241_v40, %v253_v48  ;;  %v1480_v62 = vpack.c.bf16 %v418_v55, %v414_v54  ;;  %v446_v55 = vld [vmem:[#allocation10 + $0x110] sm:$0xff] }
  0xad   :  { %v1404_v5 = vpack.c.bf16 %v520_v2, %v516_v1  ;;  %v1406_v6 = vpack.c.bf16 %v529_v4, %v525_v3  ;;  %v524_v7 = vld [vmem:[#allocation10 + $0x380] sm:$0xff]  ;;  %v533_v10 = vld [vmem:[#allocation10 + $0x3c8] sm:$0xff]  ;;  %v422_v3 = vld [vmem:[#allocation10 + $0x50] sm:$0xff] }
  0xae   :  { %1465 = vmatpush1.bf16.msra.mxu1 %v1464_v57  ;;  %v528_v8 = vld [vmem:[#allocation10 + $0x3a0] sm:$0xff]  ;;  %v537_v11 = vld [vmem:[#allocation10 + $0x3e8] sm:$0xff]  ;;  %v423_v57 = vld [vmem:[#allocation10 + $0x58] sm:$0xff] }
  0xaf   :  { %1397 = vmatpush1.bf16.msra.mxu0 %v1396_v56  ;;  %v1408_v9 = vpack.c.bf16 %v528_v8, %v524_v7  ;;  %v645_v12 = vld [vmem:[#allocation10 + $0x748] sm:$0xff]  ;;  %v1410_v13 = vpack.c.bf16 %v537_v11, %v533_v10  ;;  %v532_v15 = vld [vmem:[#allocation10 + $0x3c0] sm:$0xff]  ;;  %v426_v4 = vld [vmem:[#allocation10 + $0x70] sm:$0xff] }
  0xb0   :  { %1399 = vmatprep.subr.bf16.mxu0 %v1398_v58  ;;  %v649_v14 = vld [vmem:[#allocation10 + $0x768] sm:$0xff]  ;;  %v536_v16 = vld [vmem:[#allocation10 + $0x3e0] sm:$0xff]  ;;  %v427_v58 = vld [vmem:[#allocation10 + $0x78] sm:$0xff] }
  0xb1   :  { %v1466_v17 = vpack.c.bf16 %v649_v14, %v645_v12  ;;  %v1412_v18 = vpack.c.bf16 %v536_v16, %v532_v15  ;;  %v644_v19 = vld [vmem:[#allocation10 + $0x740] sm:$0xff]  ;;  %v653_v22 = vld [vmem:[#allocation10 + $0x788] sm:$0xff]  ;;  %v1482_v2 = vpack.c.bf16 %v427_v58, %v423_v57  ;;  %v435_v7 = vld [vmem:[#allocation10 + $0xb8] sm:$0xff]  ;;  %v1484_v14 = vpack.c.bf16 %v426_v4, %v422_v3 }
  0xb2   :  { %v648_v20 = vld [vmem:[#allocation10 + $0x760] sm:$0xff]  ;;  %v657_v23 = vld [vmem:[#allocation10 + $0x7a8] sm:$0xff]  ;;  %v981_v11 = vld [vmem:[#allocation11 + $0x18] sm:$0xff] }
  0xb3   :  { %1401 = vmatpush1.bf16.msra.mxu0 %v1400_v63  ;;  %v1468_v21 = vpack.c.bf16 %v648_v20, %v644_v19  ;;  %1467 = vmatprep.subr.bf16.mxu1 %v1466_v17  ;;  %v1470_v25 = vpack.c.bf16 %v657_v23, %v653_v22  ;;  %v652_v27 = vld [vmem:[#allocation10 + $0x780] sm:$0xff]  ;;  %v661_v31 = vld [vmem:[#allocation10 + $0x7c8] sm:$0xff]  ;;  %v258_v63 = vrot.slane %v241_v40, %v257_v50  ;;  %v980_v16 = vld [vmem:[#allocation11 + $0x10] sm:$0xff] }
  0xb4   :  { %1403 = vmatprep.subr.bf16.mxu0 %v1402_v0  ;;  %v656_v29 = vld [vmem:[#allocation10 + $0x7a0] sm:$0xff]  ;;  %v665_v32 = vld [vmem:[#allocation10 + $0x7e8] sm:$0xff]  ;;  %v434_v22 = vld [vmem:[#allocation10 + $0xb0] sm:$0xff] }
  0xb5   :  { %1469 = vmatpush1.bf16.msra.mxu1 %v1468_v21  ;;  %v1472_v30 = vpack.c.bf16 %v656_v29, %v652_v27  ;;  %v1474_v33 = vpack.c.bf16 %v665_v32, %v661_v31  ;;  %v660_v34 = vld [vmem:[#allocation10 + $0x7c0] sm:$0xff]  ;;  %v979_v10 = vld [vmem:[#allocation11 + $0x8] sm:$0xff]  ;;  %v430_v21 = vld [vmem:[#allocation10 + $0x90] sm:$0xff] }
  0xb6   :  { %1471 = vmatprep.subr.bf16.mxu1 %v1470_v25  ;;  %v664_v35 = vld [vmem:[#allocation10 + $0x7e0] sm:$0xff]  ;;  %v1606_v15 = vpack.c.bf16 %v981_v11, %v979_v10  ;;  %v983_v17 = vld [vmem:[#allocation11 + $0x28] sm:$0xff]  ;;  %v443_v25 = vld [vmem:[#allocation10 + $0xf8] sm:$0xff] }
  0xb7   :  { %1405 = vmatpush1.bf16.msra.mxu0 %v1404_v5  ;;  %v1476_v36 = vpack.c.bf16 %v664_v35, %v660_v34  ;;  %v978_v12 = vld [vmem:[#allocation11] sm:$0xff]  ;;  %v984_v29 = vld [vmem:[#allocation11 + $0x30] sm:$0xff]  ;;  %v987_v31 = vld [vmem:[#allocation11 + $0x48] sm:$0xff] }
  0xb8   :  { %1407 = vmatprep.subr.bf16.mxu0 %v1406_v6  ;;  %v431_v6 = vld [vmem:[#allocation10 + $0x98] sm:$0xff]  ;;  %v1608_v26 = vpack.c.bf16 %v980_v16, %v978_v12  ;;  %v438_v34 = vld [vmem:[#allocation10 + $0xd0] sm:$0xff] }
  0xb9   :  { %1473 = vmatpush1.bf16.msra.mxu1 %v1472_v30  ;;  %v1486_v20 = vpack.c.bf16 %v435_v7, %v431_v6  ;;  %v1488_v30 = vpack.c.bf16 %v434_v22, %v430_v21  ;;  %v989_v32 = vld [vmem:[#allocation11 + $0x58] sm:$0xff]  ;;  %v442_v35 = vld [vmem:[#allocation10 + $0xf0] sm:$0xff] }
  0xba   :  { %1475 = vmatprep.subr.bf16.mxu1 %v1474_v33  ;;  %v1490_v33 = vpack.c.bf16 %v443_v25, %v439_v24  ;;  %v451_v40 = vld [vmem:[#allocation10 + $0x138] sm:$0xff]  ;;  %v454_v6 = vld [vmem:[#allocation10 + $0x150] sm:$0xff] }
  0xbb   :  { %1409 = vmatpush1.bf16.msra.mxu0 %v1408_v9  ;;  %v455_v58 = vld [vmem:[#allocation10 + $0x158] sm:$0xff]  ;;  %v458_v7 = vld [vmem:[#allocation10 + $0x170] sm:$0xff] }
  0xbc   :  { %1411 = vmatprep.subr.bf16.mxu0 %v1410_v13  ;;  %v997_v3 = vld [vmem:[#allocation11 + $0x98] sm:$0xff]  ;;  %v1500_v16 = vpack.c.bf16 %v458_v7, %v454_v6  ;;  %v462_v22 = vld [vmem:[#allocation10 + $0x190] sm:$0xff]  ;;  %v1006_v6 = vld [vmem:[#allocation11 + $0xe0] sm:$0xff] }
  0xbd   :  { %1477 = vmatpush1.bf16.msra.mxu1 %v1476_v36  ;;  %v447_v36 = vld [vmem:[#allocation10 + $0x118] sm:$0xff]  ;;  %v466_v24 = vld [vmem:[#allocation10 + $0x1b0] sm:$0xff] }
  0xbe   :  { %1607 = vmatprep.subr.bf16.mxu1 %v1606_v15  ;;  %v1494_v54 = vpack.c.bf16 %v451_v40, %v447_v36  ;;  %v467_v10 = vld [vmem:[#allocation10 + $0x1b8] sm:$0xff]  ;;  %v996_v15 = vld [vmem:[#allocation11 + $0x90] sm:$0xff] }
  0xbf   :  { %1413 = vmatpush1.bf16.msra.mxu0 %v1412_v18  ;;  %v985_v18 = vld [vmem:[#allocation11 + $0x38] sm:$0xff]  ;;  %v470_v40 = vld [vmem:[#allocation10 + $0x1d0] sm:$0xff] }
  0xc0   :  { %1479 = vmatprep.subr.bf16.mxu0 %v1478_v28  ;;  %v1610_v27 = vpack.c.bf16 %v985_v18, %v983_v17  ;;  %v982_v28 = vld [vmem:[#allocation11 + $0x20] sm:$0xff]  ;;  %v999_v17 = vld [vmem:[#allocation11 + $0xa8] sm:$0xff]  ;;  %v1001_v18 = vld [vmem:[#allocation11 + $0xb8] sm:$0xff] }
  0xc1   :  { %v1008_v7 = vld [vmem:[#allocation11 + $0xf0] sm:$0xff] }
 0x14d   :  { %v199_v45 = vpop.f32.mrb[0].mxu0 }
 0x14e   :  { %v2159_v46 = vadd.f32 %v1306_v42, %v199_v45  ;;  %v1327_v47 = vpop.f32.mrb[1].mxu0  ;;  %v1612_v42 = vpack.c.bf16 %v984_v29, %v982_v28  ;;  %v988_v45 = vld [vmem:[#allocation11 + $0x50] sm:$0xff]  ;;  %v1626_v29 = vpack.c.bf16 %v1001_v18, %v999_v17  ;;  %v495_v17 = vld [vmem:[#allocation10 + $0x298] sm:$0xff] }
 0x14f   :  { %v1492_v47 = vpack.c.bf16 %v442_v35, %v438_v34  ;;  %v1005_v34 = vld [vmem:[#allocation11 + $0xd8] sm:$0xff] }
 0x150   :  { %v332_v49 = vpop.f32.mrb[0].mxu1  ;;  %v204_v53 = vand.u32 2147483647, %v2159_v46  ;;  %v499_v18 = vld [vmem:[#allocation10 + $0x2b8] sm:$0xff] }
 0x151   :  { %v2163_v51 = vadd.f32 %v332_v49, %v246_v43  ;;  %v334_v52 = vpop.f32.mrb[1].mxu1  ;;  %v1614_v43 = vpack.c.bf16 %v989_v32, %v987_v31  ;;  %v991_v49 = vld [vmem:[#allocation11 + $0x68] sm:$0xff]  ;;  %v1000_v31 = vld [vmem:[#allocation11 + $0xb0] sm:$0xff]  ;;  %v1504_v32 = vpack.c.bf16 %v466_v24, %v462_v22  ;;  %v1010_v22 = vld [vmem:[#allocation11 + $0x100] sm:$0xff] }
 0x152   :  { %v335_v56 = vadd.f32 %v334_v52, %v250_v44  ;;  %v205_v59 = vsub.f32 0.0, %v204_v53  ;;  %v986_v44 = vld [vmem:[#allocation11 + $0x40] sm:$0xff]  ;;  %v993_v52 = vld [vmem:[#allocation11 + $0x78] sm:$0xff]  ;;  %v1012_v24 = vld [vmem:[#allocation11 + $0x110] sm:$0xff] }
 0x153   :  { %v408_v0 = vmax.f32 %v2163_v51, 0.0  ;;  %v579_v51 = vld [vmem:[#allocation10 + $0x538] sm:$0xff] }
 0x154   :  { %v409_v61 = vmax.f32 %v335_v56, 0.0  ;;  %v206_v1 = vmul.f32 1.442695, %v205_v59  ;;  %v450_v56 = vld [vmem:[#allocation10 + $0x130] sm:$0xff]  ;;  %v459_v59 = vld [vmem:[#allocation10 + $0x178] sm:$0xff] }
 0x155   :  { %v403_v5 = vpop.f32.mrb[2].mxu0 }
 0x156   :  { %754 = vmatprep.mubr.f32.mxu0 %v409_v61  ;;  %1763 = vpow2.f32 %v206_v1  ;;  %v2171_v8 = vadd.f32 %v403_v5, %v254_v60  ;;  %v405_v9 = vpop.f32.mrb[3].mxu0  ;;  %v1616_v60 = vpack.c.bf16 %v988_v45, %v986_v44  ;;  %v1496_v1 = vpack.c.bf16 %v450_v56, %v446_v55  ;;  %v1002_v56 = vld [vmem:[#allocation11 + $0xc0] sm:$0xff] }
 0x157   :  { %755 = vmatmul.mubr.f32.vlgmr.msra.gmra.mrb[4].mxu0 %v408_v0  ;;  %v2175_v13 = vadd.f32 %v405_v9, %v258_v63  ;;  %v992_v63 = vld [vmem:[#allocation11 + $0x70] sm:$0xff]  ;;  %v1498_v5 = vpack.c.bf16 %v459_v59, %v455_v58  ;;  %v463_v9 = vld [vmem:[#allocation10 + $0x198] sm:$0xff]  ;;  %v203_v45 = vmax.f32 %v2159_v46, 0.0  ;;  %v1007_v59 = vld [vmem:[#allocation11 + $0xe8] sm:$0xff] }
 0x158   :  { %1481 = vmatpush1.bf16.msra.mxu0 %v1480_v62  ;;  %896 = vmatprep.mubr.f32.mxu0 %v409_v61  ;;  %v410_v19 = vmax.f32 %v2171_v8, 0.0  ;;  %v1618_v61 = vpack.c.bf16 %v993_v52, %v991_v49  ;;  %v990_v62 = vld [vmem:[#allocation11 + $0x60] sm:$0xff]  ;;  %v1502_v21 = vpack.c.bf16 %v467_v10, %v463_v9  ;;  %v479_v49 = vld [vmem:[#allocation10 + $0x218] sm:$0xff]  ;;  %v1011_v10 = vld [vmem:[#allocation11 + $0x108] sm:$0xff] }
 0x159   :  { %1483 = vmatprep.subr.bf16.mxu0 %v1482_v2  ;;  %v411_v23 = vmax.f32 %v2175_v13, 0.0  ;;  %v995_v2 = vld [vmem:[#allocation11 + $0x88] sm:$0xff]  ;;  %v1620_v11 = vpack.c.bf16 %v992_v63, %v990_v62  ;;  %v483_v52 = vld [vmem:[#allocation10 + $0x238] sm:$0xff]  ;;  %v478_v62 = vld [vmem:[#allocation10 + $0x210] sm:$0xff] }
 0x15a   :  { %v1622_v12 = vpack.c.bf16 %v997_v3, %v995_v2  ;;  %v482_v63 = vld [vmem:[#allocation10 + $0x230] sm:$0xff]  ;;  %v487_v2 = vld [vmem:[#allocation10 + $0x258] sm:$0xff]  ;;  %v1042_v8 = vld [vmem:[#allocation11 + $0x200] sm:$0xff] }
 0x15b   :  { %825 = vmatprep.mubr.f32.mxu1 %v411_v23  ;;  %v491_v3 = vld [vmem:[#allocation10 + $0x278] sm:$0xff]  ;;  %v1512_v9 = vpack.c.bf16 %v482_v63, %v478_v62 }
 0x15c   :  { %1485 = vmatpush1.bf16.msra.mxu0 %v1484_v14  ;;  %826 = vmatmul.mubr.f32.vlgmr.msra.gmra.mrb[2].mxu1 %v410_v19  ;;  %v994_v14 = vld [vmem:[#allocation11 + $0x80] sm:$0xff]  ;;  %v523_v62 = vld [vmem:[#allocation10 + $0x378] sm:$0xff] }
 0x15d   :  { %1487 = vmatprep.subr.bf16.mxu0 %v1486_v20  ;;  %1609 = vmatpush1.bf16.msra.mxu1 %v1608_v26  ;;  %v471_v26 = vld [vmem:[#allocation10 + $0x1d8] sm:$0xff]  ;;  %v1624_v28 = vpack.c.bf16 %v996_v15, %v994_v14  ;;  %v1514_v14 = vpack.c.bf16 %v491_v3, %v487_v2  ;;  %v486_v15 = vld [vmem:[#allocation10 + $0x250] sm:$0xff]  ;;  %v1022_v2 = vld [vmem:[#allocation11 + $0x160] sm:$0xff] }
 0x15e   :  { %1611 = vmatprep.subr.bf16.mxu1 %v1610_v27  ;;  %v475_v27 = vld [vmem:[#allocation10 + $0x1f8] sm:$0xff]  ;;  %v1024_v3 = vld [vmem:[#allocation11 + $0x170] sm:$0xff] }
 0x15f   :  { %v1506_v36 = vpack.c.bf16 %v475_v27, %v471_v26  ;;  %v1015_v26 = vld [vmem:[#allocation11 + $0x128] sm:$0xff]  ;;  %v1017_v27 = vld [vmem:[#allocation11 + $0x138] sm:$0xff] }
 0x160   :  { %1489 = vmatpush1.bf16.msra.mxu0 %v1488_v30  ;;  %v1764_v53 = vpop.eup %1763  ;;  %v998_v30 = vld [vmem:[#allocation11 + $0xa0] sm:$0xff] }
 0x161   :  { %1491 = vmatprep.subr.bf16.mxu0 %v1490_v33  ;;  %v208_v57 = vadd.f32 1.0, %v1764_v53  ;;  %1613 = vmatpush1.bf16.msra.mxu1 %v1612_v42  ;;  %v211_v4 = vmul.f32 -0.5, %v1764_v53  ;;  %v214_v25 = vand.u32 2147483647, %v1764_v53  ;;  %v1003_v33 = vld [vmem:[#allocation11 + $0xc8] sm:$0xff]  ;;  %v474_v42 = vld [vmem:[#allocation10 + $0x1f0] sm:$0xff] }
 0x162   :  { %1615 = vmatprep.subr.bf16.mxu1 %v1614_v43  ;;  %v219_v43 = vand.u32 127, %v218_v37  ;;  %v1508_v58 = vpack.c.bf16 %v474_v42, %v470_v40  ;;  %v1009_v37 = vld [vmem:[#allocation11 + $0xf8] sm:$0xff]  ;;  %v1019_v40 = vld [vmem:[#allocation11 + $0x148] sm:$0xff] }
 0x163   :  { %1765 = vlog2.f32 %v208_v57  ;;  %v212_v20 = vadd.f32 1.0, %v211_v4  ;;  %vm2185_vm2 = vcmp.lt.f32.partialorder %v214_v25, 0.0004427343  ;;  %v1004_v57 = vld [vmem:[#allocation11 + $0xd0] sm:$0xff]  ;;  %v1021_v42 = vld [vmem:[#allocation11 + $0x158] sm:$0xff] }
 0x164   :  { %1493 = vmatpush1.bf16.msra.mxu0 %v1492_v47  ;;  %vm220_vm3 = vcmp.lt.s32.totalorder %v219_v43, 32  ;;  %v1632_v4 = vpack.c.bf16 %v1004_v57, %v1002_v56  ;;  %v511_v47 = vld [vmem:[#allocation10 + $0x318] sm:$0xff]  ;;  %v1023_v57 = vld [vmem:[#allocation11 + $0x168] sm:$0xff] }
 0x165   :  { %1495 = vmatprep.subr.bf16.mxu0 %v1494_v54  ;;  %1617 = vmatpush1.bf16.msra.mxu1 %v1616_v60  ;;  %v213_v35 = vmul.f32 %v1764_v53, %v212_v20  ;;  %v1628_v54 = vpack.c.bf16 %v1000_v31, %v998_v30  ;;  %v1630_v53 = vpack.c.bf16 %v1005_v34, %v1003_v33  ;;  %v503_v30 = vld [vmem:[#allocation10 + $0x2d8] sm:$0xff]  ;;  %v1014_v34 = vld [vmem:[#allocation11 + $0x120] sm:$0xff] }
 0x166   :  { %1619 = vmatprep.subr.bf16.mxu1 %v1618_v61  ;;  %v1510_v61 = vpack.c.bf16 %v483_v52, %v479_v49  ;;  %v1636_v20 = vpack.c.bf16 %v1008_v7, %v1006_v6  ;;  %v507_v31 = vld [vmem:[#allocation10 + $0x2f8] sm:$0xff]  ;;  %v1642_v33 = vpack.c.bf16 %v1017_v27, %v1015_v26 }
 0x167   :  { %v1522_v43 = vpack.c.bf16 %v507_v31, %v503_v30  ;;  %v515_v49 = vld [vmem:[#allocation10 + $0x338] sm:$0xff] }
 0x168   :  { %1497 = vmatpush1.bf16.msra.mxu0 %v1496_v1  ;;  %v1029_v6 = vld [vmem:[#allocation11 + $0x198] sm:$0xff] }
 0x169   :  { %1499 = vmatprep.subr.bf16.mxu0 %v1498_v5  ;;  %1621 = vmatpush1.bf16.msra.mxu1 %v1620_v11  ;;  %v1634_v5 = vpack.c.bf16 %v1009_v37, %v1007_v59  ;;  %v1013_v11 = vld [vmem:[#allocation11 + $0x118] sm:$0xff]  ;;  %v1526_v59 = vpack.c.bf16 %v515_v49, %v511_v47  ;;  %v510_v37 = vld [vmem:[#allocation10 + $0x310] sm:$0xff] }
 0x16a   :  { %1623 = vmatprep.subr.bf16.mxu1 %v1622_v12  ;;  %v543_v30 = vld [vmem:[#allocation10 + $0x418] sm:$0xff] }
 0x16b   :  { %v547_v31 = vld [vmem:[#allocation10 + $0x438] sm:$0xff] }
 0x16c   :  { %1501 = vmatpush1.bf16.msra.mxu0 %v1500_v16  ;;  %v490_v16 = vld [vmem:[#allocation10 + $0x270] sm:$0xff]  ;;  %v559_v47 = vld [vmem:[#allocation10 + $0x498] sm:$0xff] }
 0x16d   :  { %1503 = vmatprep.subr.bf16.mxu0 %v1502_v21  ;;  %v1766_v44 = vpop.eup %1765  ;;  %1625 = vmatpush1.bf16.msra.mxu1 %v1624_v28  ;;  %v1638_v21 = vpack.c.bf16 %v1013_v11, %v1011_v10  ;;  %v1516_v25 = vpack.c.bf16 %v490_v16, %v486_v15  ;;  %v1518_v28 = vpack.c.bf16 %v499_v18, %v495_v17  ;;  %v522_v10 = vld [vmem:[#allocation10 + $0x370] sm:$0xff]  ;;  %v527_v11 = vld [vmem:[#allocation10 + $0x398] sm:$0xff]  ;;  %v1026_v16 = vld [vmem:[#allocation11 + $0x180] sm:$0xff] }
 0x16e   :  { %v210_v55 = vmul.f32 0.6931472, %v1766_v44  ;;  %1627 = vmatprep.subr.bf16.mxu1 %v1626_v29  ;;  %v498_v29 = vld [vmem:[#allocation10 + $0x2b0] sm:$0xff]  ;;  %v563_v49 = vld [vmem:[#allocation10 + $0x4b8] sm:$0xff] }
 0x16f   :  { %v502_v44 = vld [vmem:[#allocation10 + $0x2d0] sm:$0xff] }
 0x170   :  { %1505 = vmatpush1.bf16.msra.mxu0 %v1504_v32  ;;  %v216_v60 = vsel %vm2185_vm2, %v213_v35, %v210_v55  ;;  %v1640_v32 = vpack.c.bf16 %v1012_v24, %v1010_v22  ;;  %v1016_v35 = vld [vmem:[#allocation11 + $0x130] sm:$0xff]  ;;  %v1018_v55 = vld [vmem:[#allocation11 + $0x140] sm:$0xff]  ;;  %v535_v24 = vld [vmem:[#allocation10 + $0x3d8] sm:$0xff] }
 0x171   :  { %1507 = vmatprep.subr.bf16.mxu0 %v1506_v36  ;;  %v217_v1 = vadd.f32 %v216_v60, %v203_v45  ;;  %1629 = vmatpush1.bf16.msra.mxu1 %v1628_v54  ;;  %v506_v45 = vld [vmem:[#allocation10 + $0x2f0] sm:$0xff]  ;;  %v1644_v52 = vpack.c.bf16 %v1016_v35, %v1014_v34  ;;  %v1646_v54 = vpack.c.bf16 %v1021_v42, %v1019_v40  ;;  %v555_v40 = vld [vmem:[#allocation10 + $0x478] sm:$0xff] }
 0x172   :  { %1631 = vmatprep.subr.bf16.mxu1 %v1630_v53  ;;  %v1020_v53 = vld [vmem:[#allocation11 + $0x150] sm:$0xff]  ;;  %v1524_v56 = vpack.c.bf16 %v506_v45, %v502_v44 }
 0x173   :  { %v221_v12 = vsel %vm220_vm3, %v2159_v46, %v217_v1  ;;  %v494_v46 = vld [vmem:[#allocation10 + $0x290] sm:$0xff]  ;;  %v1648_v63 = vpack.c.bf16 %v1020_v53, %v1018_v55 }
 0x174   :  { %1509 = vmatpush1.bf16.msra.mxu0 %v1508_v58  ;;  %223 = vst.msk [vmem:[#allocation13] sm:$0xff] %vm222_vm4, %v221_v12  ;;  %v1520_v36 = vpack.c.bf16 %v498_v29, %v494_v46  ;;  %v1025_v58 = vld [vmem:[#allocation11 + $0x178] sm:$0xff]  ;;  %v514_v60 = vld [vmem:[#allocation10 + $0x330] sm:$0xff] }
 0x175   :  { %1511 = vmatprep.subr.bf16.mxu0 %v1510_v61  ;;  %1633 = vmatpush1.bf16.msra.mxu1 %v1632_v4  ;;  %v519_v61 = vld [vmem:[#allocation10 + $0x358] sm:$0xff]  ;;  %v1650_v1 = vpack.c.bf16 %v1025_v58, %v1023_v57  ;;  %v1528_v4 = vpack.c.bf16 %v514_v60, %v510_v37  ;;  %v1028_v17 = vld [vmem:[#allocation11 + $0x190] sm:$0xff] }
 0x176   :  { %1635 = vmatprep.subr.bf16.mxu1 %v1634_v5  ;;  %v1027_v5 = vld [vmem:[#allocation11 + $0x188] sm:$0xff]  ;;  %v1530_v7 = vpack.c.bf16 %v523_v62, %v519_v61  ;;  %v531_v12 = vld [vmem:[#allocation10 + $0x3b8] sm:$0xff]  ;;  %v530_v22 = vld [vmem:[#allocation10 + $0x3b0] sm:$0xff]  ;;  %v1656_v26 = vpack.c.bf16 %v1028_v17, %v1026_v16 }
 0x177   :  { %v1654_v15 = vpack.c.bf16 %v1029_v6, %v1027_v5  ;;  %v534_v46 = vld [vmem:[#allocation10 + $0x3d0] sm:$0xff]  ;;  %v571_v57 = vld [vmem:[#allocation10 + $0x4f8] sm:$0xff]  ;;  %v1031_v16 = vld [vmem:[#allocation11 + $0x1a8] sm:$0xff] }
 0x178   :  { %1513 = vmatpush1.bf16.msra.mxu0 %v1512_v9  ;;  %v518_v9 = vld [vmem:[#allocation10 + $0x350] sm:$0xff]  ;;  %v575_v61 = vld [vmem:[#allocation10 + $0x518] sm:$0xff] }
 0x179   :  { %1515 = vmatprep.subr.bf16.mxu0 %v1514_v14  ;;  %1637 = vmatpush1.bf16.msra.mxu1 %v1636_v20  ;;  %v1652_v14 = vpack.c.bf16 %v1024_v3, %v1022_v2  ;;  %v1532_v18 = vpack.c.bf16 %v522_v10, %v518_v9  ;;  %v1534_v20 = vpack.c.bf16 %v531_v12, %v527_v11  ;;  %v538_v29 = vld [vmem:[#allocation10 + $0x3f0] sm:$0xff]  ;;  %v591_v6 = vld [vmem:[#allocation10 + $0x598] sm:$0xff] }
 0x17a   :  { %1639 = vmatprep.subr.bf16.mxu1 %v1638_v21  ;;  %v526_v21 = vld [vmem:[#allocation10 + $0x390] sm:$0xff]  ;;  %v1558_v13 = vpack.c.bf16 %v579_v51, %v575_v61  ;;  %v1033_v17 = vld [vmem:[#allocation11 + $0x1b8] sm:$0xff] }
 0x17b   :  { %v1536_v27 = vpack.c.bf16 %v530_v22, %v526_v21  ;;  %v542_v34 = vld [vmem:[#allocation10 + $0x410] sm:$0xff]  ;;  %v1045_v61 = vld [vmem:[#allocation11 + $0x218] sm:$0xff] }
 0x17c   :  { %1517 = vmatpush1.bf16.msra.mxu0 %v1516_v25  ;;  %v539_v25 = vld [vmem:[#allocation10 + $0x3f8] sm:$0xff]  ;;  %v546_v35 = vld [vmem:[#allocation10 + $0x430] sm:$0xff] }
 0x17d   :  { %1519 = vmatprep.subr.bf16.mxu0 %v1518_v28  ;;  %1641 = vmatpush1.bf16.msra.mxu1 %v1640_v32  ;;  %v1538_v28 = vpack.c.bf16 %v539_v25, %v535_v24  ;;  %v1540_v32 = vpack.c.bf16 %v538_v29, %v534_v46  ;;  %v1544_v42 = vpack.c.bf16 %v546_v35, %v542_v34  ;;  %v550_v44 = vld [vmem:[#allocation10 + $0x450] sm:$0xff]  ;;  %v1035_v25 = vld [vmem:[#allocation11 + $0x1c8] sm:$0xff] }
 0x17e   :  { %1643 = vmatprep.subr.bf16.mxu1 %v1642_v33  ;;  %v1542_v33 = vpack.c.bf16 %v547_v31, %v543_v30  ;;  %v554_v45 = vld [vmem:[#allocation10 + $0x470] sm:$0xff]  ;;  %v607_v30 = vld [vmem:[#allocation10 + $0x618] sm:$0xff] }
 0x17f   :  { %v558_v55 = vld [vmem:[#allocation10 + $0x490] sm:$0xff]  ;;  %v611_v31 = vld [vmem:[#allocation10 + $0x638] sm:$0xff] }
 0x180   :  { %1521 = vmatpush1.bf16.msra.mxu0 %v1520_v36  ;;  %v551_v36 = vld [vmem:[#allocation10 + $0x458] sm:$0xff]  ;;  %v562_v53 = vld [vmem:[#allocation10 + $0x4b0] sm:$0xff] }
 0x181   :  { %1523 = vmatprep.subr.bf16.mxu0 %v1522_v43  ;;  %1645 = vmatpush1.bf16.msra.mxu1 %v1644_v52  ;;  %v1546_v43 = vpack.c.bf16 %v555_v40, %v551_v36  ;;  %v1548_v52 = vpack.c.bf16 %v554_v45, %v550_v44  ;;  %v1552_v58 = vpack.c.bf16 %v562_v53, %v558_v55  ;;  %v566_v37 = vld [vmem:[#allocation10 + $0x4d0] sm:$0xff]  ;;  %v619_v44 = vld [vmem:[#allocation10 + $0x678] sm:$0xff]  ;;  %v1039_v45 = vld [vmem:[#allocation11 + $0x1e8] sm:$0xff] }
 0x182   :  { %1647 = vmatprep.subr.bf16.mxu1 %v1646_v54  ;;  %v1550_v54 = vpack.c.bf16 %v563_v49, %v559_v47  ;;  %v570_v60 = vld [vmem:[#allocation10 + $0x4f0] sm:$0xff]  ;;  %v1574_v36 = vpack.c.bf16 %v611_v31, %v607_v30  ;;  %v1041_v47 = vld [vmem:[#allocation11 + $0x1f8] sm:$0xff] }
 0x183   :  { %v578_v62 = vld [vmem:[#allocation10 + $0x530] sm:$0xff]  ;;  %v1666_v49 = vpack.c.bf16 %v1041_v47, %v1039_v45 }
 0x184   :  { %1525 = vmatpush1.bf16.msra.mxu0 %v1524_v56  ;;  %v567_v56 = vld [vmem:[#allocation10 + $0x4d8] sm:$0xff]  ;;  %v586_v5 = vld [vmem:[#allocation10 + $0x570] sm:$0xff] }
 0x185   :  { %1527 = vmatprep.subr.bf16.mxu0 %v1526_v59  ;;  %1649 = vmatpush1.bf16.msra.mxu1 %v1648_v63  ;;  %v1554_v59 = vpack.c.bf16 %v571_v57, %v567_v56  ;;  %v583_v63 = vld [vmem:[#allocation10 + $0x558] sm:$0xff]  ;;  %v590_v11 = vld [vmem:[#allocation10 + $0x590] sm:$0xff] }
 0x186   :  { %1651 = vmatprep.subr.bf16.mxu1 %v1650_v1  ;;  %v587_v1 = vld [vmem:[#allocation10 + $0x578] sm:$0xff]  ;;  %v594_v12 = vld [vmem:[#allocation10 + $0x5b0] sm:$0xff] }
 0x187   :  { %v1562_v3 = vpack.c.bf16 %v587_v1, %v583_v63  ;;  %v1032_v21 = vld [vmem:[#allocation11 + $0x1b0] sm:$0xff]  ;;  %v1568_v22 = vpack.c.bf16 %v594_v12, %v590_v11  ;;  %v631_v63 = vld [vmem:[#allocation10 + $0x6d8] sm:$0xff] }
 0x188   :  { %1529 = vmatpush1.bf16.msra.mxu0 %v1528_v4  ;;  %v582_v4 = vld [vmem:[#allocation10 + $0x550] sm:$0xff]  ;;  %v635_v1 = vld [vmem:[#allocation10 + $0x6f8] sm:$0xff] }
 0x189   :  { %1531 = vmatprep.subr.bf16.mxu0 %v1530_v7  ;;  %1653 = vmatpush1.bf16.msra.mxu1 %v1652_v14  ;;  %v595_v7 = vld [vmem:[#allocation10 + $0x5b8] sm:$0xff]  ;;  %v1564_v9 = vpack.c.bf16 %v586_v5, %v582_v4  ;;  %v602_v46 = vld [vmem:[#allocation10 + $0x5f0] sm:$0xff] }
 0x18a   :  { %1655 = vmatprep.subr.bf16.mxu1 %v1654_v15  ;;  %v1566_v10 = vpack.c.bf16 %v595_v7, %v591_v6  ;;  %v599_v14 = vld [vmem:[#allocation10 + $0x5d8] sm:$0xff]  ;;  %v606_v40 = vld [vmem:[#allocation10 + $0x610] sm:$0xff] }
 0x18b   :  { %v603_v15 = vld [vmem:[#allocation10 + $0x5f8] sm:$0xff]  ;;  %v614_v57 = vld [vmem:[#allocation10 + $0x650] sm:$0xff] }
 0x18c   :  { %1533 = vmatpush1.bf16.msra.mxu0 %v1532_v18  ;;  %v1658_v18 = vpack.c.bf16 %v1033_v17, %v1031_v16  ;;  %v630_v4 = vld [vmem:[#allocation10 + $0x6d0] sm:$0xff]  ;;  %v639_v6 = vld [vmem:[#allocation10 + $0x718] sm:$0xff] }
 0x18d   :  { %1535 = vmatprep.subr.bf16.mxu0 %v1534_v20  ;;  %1657 = vmatpush1.bf16.msra.mxu1 %v1656_v26  ;;  %v1030_v20 = vld [vmem:[#allocation11 + $0x1a0] sm:$0xff]  ;;  %v1037_v26 = vld [vmem:[#allocation11 + $0x1d8] sm:$0xff]  ;;  %v634_v5 = vld [vmem:[#allocation10 + $0x6f0] sm:$0xff] }
 0x18e   :  { %v1660_v24 = vpack.c.bf16 %v1032_v21, %v1030_v20  ;;  %1659 = vmatprep.subr.bf16.mxu1 %v1658_v18  ;;  %v1662_v29 = vpack.c.bf16 %v1037_v26, %v1035_v25  ;;  %v643_v7 = vld [vmem:[#allocation10 + $0x738] sm:$0xff]  ;;  %v638_v11 = vld [vmem:[#allocation10 + $0x710] sm:$0xff] }
 0x18f   :  { %v642_v12 = vld [vmem:[#allocation10 + $0x730] sm:$0xff]  ;;  %v655_v21 = vld [vmem:[#allocation10 + $0x798] sm:$0xff] }
 0x190   :  { %1537 = vmatpush1.bf16.msra.mxu0 %v1536_v27  ;;  %v1570_v27 = vpack.c.bf16 %v603_v15, %v599_v14  ;;  %v647_v14 = vld [vmem:[#allocation10 + $0x758] sm:$0xff]  ;;  %v1592_v16 = vpack.c.bf16 %v642_v12, %v638_v11  ;;  %v646_v18 = vld [vmem:[#allocation10 + $0x750] sm:$0xff]  ;;  %v1063_v12 = vld [vmem:[#allocation11 + $0x2a8] sm:$0xff] }
 0x191   :  { %1539 = vmatprep.subr.bf16.mxu0 %v1538_v28  ;;  %v598_v28 = vld [vmem:[#allocation10 + $0x5d0] sm:$0xff]  ;;  %1661 = vmatpush1.bf16.msra.mxu1 %v1660_v24  ;;  %v651_v15 = vld [vmem:[#allocation10 + $0x778] sm:$0xff] }
 0x192   :  { %1663 = vmatprep.subr.bf16.mxu1 %v1662_v29  ;;  %v1572_v34 = vpack.c.bf16 %v602_v46, %v598_v28  ;;  %v1594_v17 = vpack.c.bf16 %v651_v15, %v647_v14  ;;  %v650_v20 = vld [vmem:[#allocation10 + $0x770] sm:$0xff]  ;;  %v663_v28 = vld [vmem:[#allocation10 + $0x7d8] sm:$0xff] }
 0x193   :  { %v1596_v24 = vpack.c.bf16 %v650_v20, %v646_v18  ;;  %v654_v26 = vld [vmem:[#allocation10 + $0x790] sm:$0xff]  ;;  %v667_v46 = vld [vmem:[#allocation10 + $0x7f8] sm:$0xff]  ;;  %v1067_v20 = vld [vmem:[#allocation11 + $0x2c8] sm:$0xff] }
 0x194   :  { %1541 = vmatpush1.bf16.msra.mxu0 %v1540_v32  ;;  %v1034_v32 = vld [vmem:[#allocation11 + $0x1c0] sm:$0xff]  ;;  %v1602_v30 = vpack.c.bf16 %v667_v46, %v663_v28  ;;  %v662_v31 = vld [vmem:[#allocation10 + $0x7d0] sm:$0xff]  ;;  %v1065_v14 = vld [vmem:[#allocation11 + $0x2b8] sm:$0xff] }
 0x195   :  { %1543 = vmatprep.subr.bf16.mxu0 %v1542_v33  ;;  %v1036_v33 = vld [vmem:[#allocation11 + $0x1d0] sm:$0xff]  ;;  %v1073_v28 = vld [vmem:[#allocation11 + $0x2f8] sm:$0xff] }
 0x196   :  { %v1664_v35 = vpack.c.bf16 %v1036_v33, %v1034_v32  ;;  %v666_v32 = vld [vmem:[#allocation10 + $0x7f0] sm:$0xff] }
 0x197   :  { %897 = vmatmul.mubr.f32.vlgmr.msra.gmra.mrb[6].mxu0 %v408_v0  ;;  %v1556_v0 = vpack.c.bf16 %v570_v60, %v566_v37  ;;  %v627_v37 = vld [vmem:[#allocation10 + $0x6b8] sm:$0xff]  ;;  %v1043_v60 = vld [vmem:[#allocation11 + $0x208] sm:$0xff]  ;;  %v1604_v33 = vpack.c.bf16 %v666_v32, %v662_v31  ;;  %v1060_v11 = vld [vmem:[#allocation11 + $0x290] sm:$0xff] }
 0x198   :  { %1545 = vmatpush1.bf16.msra.mxu0 %v1544_v42  ;;  %967 = vmatprep.mubr.f32.mxu0 %v411_v23  ;;  %v574_v23 = vld [vmem:[#allocation10 + $0x510] sm:$0xff]  ;;  %v1075_v32 = vld [vmem:[#allocation11 + $0x308] sm:$0xff] }
 0x199   :  { %1547 = vmatprep.subr.bf16.mxu0 %v1546_v43  ;;  %v1560_v2 = vpack.c.bf16 %v578_v62, %v574_v23  ;;  %v610_v42 = vld [vmem:[#allocation10 + $0x630] sm:$0xff]  ;;  %v615_v43 = vld [vmem:[#allocation10 + $0x658] sm:$0xff]  ;;  %1665 = vmatpush1.bf16.msra.mxu1 %v1664_v35 }
 0x19a   :  { %v1576_v55 = vpack.c.bf16 %v610_v42, %v606_v40  ;;  %v1578_v56 = vpack.c.bf16 %v619_v44, %v615_v43  ;;  %1667 = vmatprep.subr.bf16.mxu1 %v1666_v49  ;;  %v622_v23 = vld [vmem:[#allocation10 + $0x690] sm:$0xff] }
 0x19b   :  { %v626_v62 = vld [vmem:[#allocation10 + $0x6b0] sm:$0xff] }
 0x19c   :  { %1549 = vmatpush1.bf16.msra.mxu0 %v1548_v52  ;;  %v1038_v52 = vld [vmem:[#allocation11 + $0x1e0] sm:$0xff]  ;;  %v1064_v18 = vld [vmem:[#allocation11 + $0x2b0] sm:$0xff] }
 0x19d   :  { %1551 = vmatprep.subr.bf16.mxu0 %v1550_v54  ;;  %v1040_v54 = vld [vmem:[#allocation11 + $0x1f0] sm:$0xff] }
 0x19e   :  { %v1668_v53 = vpack.c.bf16 %v1040_v54, %v1038_v52  ;;  %v1047_v54 = vld [vmem:[#allocation11 + $0x228] sm:$0xff]  ;;  %v1072_v31 = vld [vmem:[#allocation11 + $0x2f0] sm:$0xff] }
 0x1a0   :  { %1553 = vmatpush1.bf16.msra.mxu0 %v1552_v58  ;;  %v618_v58 = vld [vmem:[#allocation10 + $0x670] sm:$0xff]  ;;  %1669 = vmatpush1.bf16.msra.mxu1 %v1668_v53 }
 0x1a1   :  { %1555 = vmatprep.subr.bf16.mxu0 %v1554_v59  ;;  %v623_v59 = vld [vmem:[#allocation10 + $0x698] sm:$0xff]  ;;  %v1580_v51 = vpack.c.bf16 %v618_v58, %v614_v57 }
 0x1a4   :  { %1557 = vmatpush1.bf16.msra.mxu0 %v1556_v0  ;;  %v1670_v0 = vpack.c.bf16 %v1045_v61, %v1043_v60  ;;  %v1051_v60 = vld [vmem:[#allocation11 + $0x248] sm:$0xff]  ;;  %v1053_v61 = vld [vmem:[#allocation11 + $0x258] sm:$0xff] }
 0x1a5   :  { %1559 = vmatprep.subr.bf16.mxu0 %v1558_v13  ;;  %v1582_v13 = vpack.c.bf16 %v627_v37, %v623_v59  ;;  %v1046_v59 = vld [vmem:[#allocation11 + $0x220] sm:$0xff]  ;;  %v1048_v37 = vld [vmem:[#allocation11 + $0x230] sm:$0xff] }
 0x1a6   :  { %1671 = vmatprep.subr.bf16.mxu1 %v1670_v0  ;;  %v1678_v0 = vpack.c.bf16 %v1053_v61, %v1051_v60  ;;  %v1086_v60 = vld [vmem:[#allocation11 + $0x360] sm:$0xff]  ;;  %v1088_v61 = vld [vmem:[#allocation11 + $0x370] sm:$0xff] }
 0x1a8   :  { %1561 = vmatpush1.bf16.msra.mxu0 %v1560_v2  ;;  %v1584_v2 = vpack.c.bf16 %v626_v62, %v622_v23  ;;  %v1052_v23 = vld [vmem:[#allocation11 + $0x250] sm:$0xff]  ;;  %v1055_v62 = vld [vmem:[#allocation11 + $0x268] sm:$0xff] }
 0x1a9   :  { %1563 = vmatprep.subr.bf16.mxu0 %v1562_v3  ;;  %v1586_v3 = vpack.c.bf16 %v635_v1, %v631_v63  ;;  %v1057_v63 = vld [vmem:[#allocation11 + $0x278] sm:$0xff] }
 0x1ac   :  { %1565 = vmatpush1.bf16.msra.mxu0 %v1564_v9  ;;  %v1588_v9 = vpack.c.bf16 %v634_v5, %v630_v4  ;;  %v1056_v4 = vld [vmem:[#allocation11 + $0x270] sm:$0xff]  ;;  %v1059_v5 = vld [vmem:[#allocation11 + $0x288] sm:$0xff] }
 0x1ad   :  { %1567 = vmatprep.subr.bf16.mxu0 %v1566_v10  ;;  %v1590_v10 = vpack.c.bf16 %v643_v7, %v639_v6  ;;  %v1061_v6 = vld [vmem:[#allocation11 + $0x298] sm:$0xff] }
 0x1b0   :  { %1569 = vmatpush1.bf16.msra.mxu0 %v1568_v22  ;;  %v659_v22 = vld [vmem:[#allocation10 + $0x7b8] sm:$0xff] }
 0x1b1   :  { %1571 = vmatprep.subr.bf16.mxu0 %v1570_v27  ;;  %v1598_v25 = vpack.c.bf16 %v659_v22, %v655_v21  ;;  %v658_v27 = vld [vmem:[#allocation10 + $0x7b0] sm:$0xff]  ;;  %v1069_v21 = vld [vmem:[#allocation11 + $0x2d8] sm:$0xff] }
 0x1b2   :  { %v1600_v29 = vpack.c.bf16 %v658_v27, %v654_v26  ;;  %v1068_v26 = vld [vmem:[#allocation11 + $0x2d0] sm:$0xff]  ;;  %v1071_v27 = vld [vmem:[#allocation11 + $0x2e8] sm:$0xff] }
 0x1b4   :  { %1573 = vmatpush1.bf16.msra.mxu0 %v1572_v34  ;;  %v2201_v34 = vld [vmem:[%s2249_s7] sm:$0xf]  ;;  %s1978_s7 = smov [#allocation13]  }
 0x1b5   :  { %1575 = vmatprep.subr.bf16.mxu0 %v1574_v36  ;;  %v673_v36 = vrot.slane %v2201_v34, %v2146_v39  ;;  %v677_v42 = vrot.slane %v2201_v34, %v2152_v41  ;;  %s1280_s20 = sshll.u32 %s1978_s7, 4  ;;  %s1281_s20 = int_to_ptr.vmem [resolvable:$true] %s1280_s20 }
 0x1b6   :  { %s1907_s16 = scalar_lea.vmem %s1281_s20, 128  ;;  %p1912_p7 = scmp.lt.s32.totalorder %s1281_s20, %s1281_s20 }
 0x1b7   :  { %p1908_p6 = scmp.ne.s32.totalorder %s1281_s20, %s1907_s16  ;;  %p1913_p8 = scmp.lt.s32.totalorder %s1907_s16, %s1907_s16 }
 0x1b8   :  { %1577 = vmatpush1.bf16.msra.mxu0 %v1576_v55  ;;  %v1049_v55 = vld [vmem:[#allocation11 + $0x238] sm:$0xff] }
 0x1b9   :  { %1579 = vmatprep.subr.bf16.mxu0 %v1578_v56  ;;  %v1674_v58 = vpack.c.bf16 %v1049_v55, %v1047_v54  ;;  %p1914_p9 = por %p1913_p8, %p1912_p7 }
 0x1bb   :  { %p1915_p10 = pnand %p1914_p9, %p1908_p6 }
 0x1bc   :  { %1581 = vmatpush1.bf16.msra.mxu0 %v1580_v51  ;;  %v1676_v51 = vpack.c.bf16 %v1048_v37, %v1046_v59 }
 0x1bd   :  { %1583 = vmatprep.subr.bf16.mxu0 %v1582_v13  ;;  %v1050_v13 = vld [vmem:[#allocation11 + $0x240] sm:$0xff] }
 0x1be   :  { %v1680_v1 = vpack.c.bf16 %v1052_v23, %v1050_v13  ;;  %v1716_v13 = vpack.c.bf16 %v1088_v61, %v1086_v60 }
 0x1c0   :  { %1585 = vmatpush1.bf16.msra.mxu0 %v1584_v2  ;;  %v1682_v2 = vpack.c.bf16 %v1057_v63, %v1055_v62  ;;  %v1090_v62 = vld [vmem:[#allocation11 + $0x380] sm:$0xff]  ;;  %v1092_v63 = vld [vmem:[#allocation11 + $0x390] sm:$0xff] }
 0x1c1   :  { %1587 = vmatprep.subr.bf16.mxu0 %v1586_v3  ;;  %v1054_v3 = vld [vmem:[#allocation11 + $0x260] sm:$0xff] }
 0x1c2   :  { %v1684_v7 = vpack.c.bf16 %v1056_v4, %v1054_v3  ;;  %v1720_v3 = vpack.c.bf16 %v1092_v63, %v1090_v62 }
 0x1c4   :  { %1589 = vmatpush1.bf16.msra.mxu0 %v1588_v9  ;;  %v1686_v9 = vpack.c.bf16 %v1061_v6, %v1059_v5  ;;  %v1094_v5 = vld [vmem:[#allocation11 + $0x3a0] sm:$0xff]  ;;  %v1096_v6 = vld [vmem:[#allocation11 + $0x3b0] sm:$0xff] }
 0x1c5   :  { %1591 = vmatprep.subr.bf16.mxu0 %v1590_v10  ;;  %v1058_v10 = vld [vmem:[#allocation11 + $0x280] sm:$0xff] }
 0x1c6   :  { %v1688_v15 = vpack.c.bf16 %v1060_v11, %v1058_v10  ;;  %v1724_v10 = vpack.c.bf16 %v1096_v6, %v1094_v5 }
 0x1c8   :  { %1593 = vmatpush1.bf16.msra.mxu0 %v1592_v16  ;;  %v1690_v16 = vpack.c.bf16 %v1065_v14, %v1063_v12  ;;  %v1098_v12 = vld [vmem:[#allocation11 + $0x3c0] sm:$0xff]  ;;  %v1100_v14 = vld [vmem:[#allocation11 + $0x3d0] sm:$0xff] }
 0x1c9   :  { %1595 = vmatprep.subr.bf16.mxu0 %v1594_v17  ;;  %v1062_v17 = vld [vmem:[#allocation11 + $0x2a0] sm:$0xff] }
 0x1ca   :  { %v1692_v22 = vpack.c.bf16 %v1064_v18, %v1062_v17  ;;  %v1728_v17 = vpack.c.bf16 %v1100_v14, %v1098_v12 }
 0x1cc   :  { %1597 = vmatpush1.bf16.msra.mxu0 %v1596_v24  ;;  %v1694_v24 = vpack.c.bf16 %v1069_v21, %v1067_v20  ;;  %v1102_v20 = vld [vmem:[#allocation11 + $0x3e0] sm:$0xff]  ;;  %v1104_v21 = vld [vmem:[#allocation11 + $0x3f0] sm:$0xff] }
 0x1cd   :  { %1599 = vmatprep.subr.bf16.mxu0 %v1598_v25  ;;  %v1066_v25 = vld [vmem:[#allocation11 + $0x2c0] sm:$0xff] }
 0x1ce   :  { %v1696_v46 = vpack.c.bf16 %v1068_v26, %v1066_v25  ;;  %v685_v25 = vrot.slane %v2201_v34, %v257_v50 }
 0x1d0   :  { %1601 = vmatpush1.bf16.msra.mxu0 %v1600_v29  ;;  %v1698_v29 = vpack.c.bf16 %v1073_v28, %v1071_v27 }
 0x1d1   :  { %1603 = vmatprep.subr.bf16.mxu0 %v1602_v30  ;;  %v1070_v30 = vld [vmem:[#allocation11 + $0x2e0] sm:$0xff] }
 0x1d4   :  { %1605 = vmatpush1.bf16.msra.mxu0 %v1604_v33  ;;  %v1077_v33 = vld [vmem:[#allocation11 + $0x318] sm:$0xff] }
 0x1d7   :  { %968 = vmatmul.mubr.f32.vlgmr.msra.gmra.mrb[6].mxu0 %v410_v19  ;;  %v1044_v19 = vld [vmem:[#allocation11 + $0x210] sm:$0xff] }
 0x1d8   :  { %v1672_v56 = vpack.c.bf16 %v1044_v19, %v1042_v8  ;;  %v1080_v8 = vld [vmem:[#allocation11 + $0x330] sm:$0xff]  ;;  %v1083_v19 = vld [vmem:[#allocation11 + $0x348] sm:$0xff] }
 0x22a   :  { %v756_v35 = vpop.f32.mrb[4].mxu0 }
 0x22b   :  { %v758_v40 = vpop.f32.mrb[5].mxu0  ;;  %v757_v43 = vadd.f32 %v756_v35, %v673_v36  ;;  %v1700_v35 = vpack.c.bf16 %v1072_v31, %v1070_v30  ;;  %v1702_v36 = vpack.c.bf16 %v1077_v33, %v1075_v32 }
 0x22c   :  { %v759_v44 = vadd.f32 %v758_v40, %v677_v42  ;;  %v1074_v40 = vld [vmem:[#allocation11 + $0x300] sm:$0xff]  ;;  %v1076_v42 = vld [vmem:[#allocation11 + $0x310] sm:$0xff] }
 0x22f   :  { %v827_v45 = vpop.f32.mrb[2].mxu1 }
 0x230   :  { %v828_v47 = vadd.f32 %v827_v45, %v757_v43  ;;  %v829_v49 = vpop.f32.mrb[3].mxu1  ;;  %v1079_v43 = vld [vmem:[#allocation11 + $0x328] sm:$0xff]  ;;  %v1704_v45 = vpack.c.bf16 %v1076_v42, %v1074_v40 }
 0x231   :  { %v830_v52 = vadd.f32 %v829_v49, %v759_v44  ;;  %v1081_v44 = vld [vmem:[#allocation11 + $0x338] sm:$0xff]  ;;  %v1078_v49 = vld [vmem:[#allocation11 + $0x320] sm:$0xff] }
 0x232   :  { %v974_v57 = vmax.f32 %v828_v47, 0.0  ;;  %v1706_v47 = vpack.c.bf16 %v1081_v44, %v1079_v43  ;;  %v1708_v54 = vpack.c.bf16 %v1080_v8, %v1078_v49 }
 0x233   :  { %v975_v53 = vmax.f32 %v830_v52, 0.0  ;;  %v1085_v52 = vld [vmem:[#allocation11 + $0x358] sm:$0xff] }
 0x234   :  { %v1710_v55 = vpack.c.bf16 %v1085_v52, %v1083_v19 }
 0x235   :  { %1182 = vmatprep.mubr.f32.mxu1 %v975_v53  ;;  %v1082_v53 = vld [vmem:[#allocation11 + $0x340] sm:$0xff] }
 0x236   :  { %1183 = vmatmul.mubr.f32.vlgmr.msra.gmra.mrb[4].mxu1 %v974_v57  ;;  %v1087_v57 = vld [vmem:[#allocation11 + $0x368] sm:$0xff] }
 0x237   :  { %1673 = vmatpush1.bf16.msra.mxu1 %v1672_v56  ;;  %v1084_v56 = vld [vmem:[#allocation11 + $0x350] sm:$0xff] }
 0x238   :  { %1675 = vmatprep.subr.bf16.mxu1 %v1674_v58  ;;  %v1089_v58 = vld [vmem:[#allocation11 + $0x378] sm:$0xff]  ;;  %v1712_v59 = vpack.c.bf16 %v1084_v56, %v1082_v53 }
 0x239   :  { %v1714_v37 = vpack.c.bf16 %v1089_v58, %v1087_v57 }
 0x23b   :  { %1677 = vmatpush1.bf16.msra.mxu1 %v1676_v51  ;;  %v1091_v51 = vld [vmem:[#allocation11 + $0x388] sm:$0xff] }
 0x23c   :  { %1679 = vmatprep.subr.bf16.mxu1 %v1678_v0  ;;  %v1093_v0 = vld [vmem:[#allocation11 + $0x398] sm:$0xff] }
 0x23d   :  { %v1718_v23 = vpack.c.bf16 %v1093_v0, %v1091_v51 }
 0x23f   :  { %1681 = vmatpush1.bf16.msra.mxu1 %v1680_v1  ;;  %v1095_v1 = vld [vmem:[#allocation11 + $0x3a8] sm:$0xff] }
 0x240   :  { %1683 = vmatprep.subr.bf16.mxu1 %v1682_v2  ;;  %v1097_v2 = vld [vmem:[#allocation11 + $0x3b8] sm:$0xff] }
 0x241   :  { %v1722_v4 = vpack.c.bf16 %v1097_v2, %v1095_v1 }
 0x243   :  { %1685 = vmatpush1.bf16.msra.mxu1 %v1684_v7  ;;  %v1099_v7 = vld [vmem:[#allocation11 + $0x3c8] sm:$0xff] }
 0x244   :  { %1687 = vmatprep.subr.bf16.mxu1 %v1686_v9  ;;  %v1101_v9 = vld [vmem:[#allocation11 + $0x3d8] sm:$0xff] }
 0x245   :  { %v1726_v11 = vpack.c.bf16 %v1101_v9, %v1099_v7 }
 0x247   :  { %1689 = vmatpush1.bf16.msra.mxu1 %v1688_v15  ;;  %v1103_v15 = vld [vmem:[#allocation11 + $0x3e8] sm:$0xff] }
 0x248   :  { %1691 = vmatprep.subr.bf16.mxu1 %v1690_v16  ;;  %v1105_v16 = vld [vmem:[#allocation11 + $0x3f8] sm:$0xff] }
 0x249   :  { %v1730_v18 = vpack.c.bf16 %v1105_v16, %v1103_v15 }
 0x24b   :  { %1693 = vmatpush1.bf16.msra.mxu1 %v1692_v22  ;;  %v1732_v22 = vpack.c.bf16 %v1104_v21, %v1102_v20 }
 0x24c   :  { %1695 = vmatprep.subr.bf16.mxu1 %v1694_v24  ;;  %v681_v24 = vrot.slane %v2201_v34, %v253_v48 }
 0x24f   :  { %1697 = vmatpush1.bf16.msra.mxu1 %v1696_v46 }
 0x250   :  { %1699 = vmatprep.subr.bf16.mxu1 %v1698_v29 }
 0x253   :  { %1701 = vmatpush1.bf16.msra.mxu1 %v1700_v35 }
 0x254   :  { %1703 = vmatprep.subr.bf16.mxu1 %v1702_v36 }
 0x257   :  { %1705 = vmatpush1.bf16.msra.mxu1 %v1704_v45 }
 0x258   :  { %1707 = vmatprep.subr.bf16.mxu1 %v1706_v47 }
 0x25b   :  { %1709 = vmatpush1.bf16.msra.mxu1 %v1708_v54 }
 0x25c   :  { %1711 = vmatprep.subr.bf16.mxu1 %v1710_v55 }
 0x25f   :  { %1713 = vmatpush1.bf16.msra.mxu1 %v1712_v59 }
 0x260   :  { %1715 = vmatprep.subr.bf16.mxu1 %v1714_v37 }
 0x263   :  { %1717 = vmatpush1.bf16.msra.mxu1 %v1716_v13 }
 0x264   :  { %1719 = vmatprep.subr.bf16.mxu1 %v1718_v23 }
 0x267   :  { %1721 = vmatpush1.bf16.msra.mxu1 %v1720_v3 }
 0x268   :  { %1723 = vmatprep.subr.bf16.mxu1 %v1722_v4 }
 0x26b   :  { %1725 = vmatpush1.bf16.msra.mxu1 %v1724_v10 }
 0x26c   :  { %1727 = vmatprep.subr.bf16.mxu1 %v1726_v11 }
 0x26f   :  { %1729 = vmatpush1.bf16.msra.mxu1 %v1728_v17 }
 0x270   :  { %1731 = vmatprep.subr.bf16.mxu1 %v1730_v18 }
 0x273   :  { %1733 = vmatpush1.bf16.msra.mxu1 %v1732_v22 }
 0x2aa   :  { %v969_v26 = vpop.f32.mrb[6].mxu0 }
 0x2ab   :  { %v1738_v27 = vadd.f32 %v969_v26, %v681_v24  ;;  %v971_v28 = vpop.f32.mrb[7].mxu0 }
 0x2ac   :  { %v1739_v46 = vadd.f32 %v971_v28, %v685_v25 }
 0x2ad   :  { %v976_v30 = vmax.f32 %v1738_v27, 0.0 }
 0x2ae   :  { %v977_v29 = vmax.f32 %v1739_v46, 0.0 }
 0x2b0   :  { %1253 = vmatprep.mubr.f32.mxu1 %v977_v29 }
 0x2b1   :  { %1254 = vmatmul.mubr.f32.vlgmr.msra.gmra.mrb[4].mxu1 %v976_v30 }
 0x2b2   :  { %1918 = shalt.err (!%p1915_p10)
}
 0x2b3   :  { %s1919_s21 = scalar_lea.hbm %s2252_s10, 128 }
 0x2b4   :  { %p1920_p11 = scmp.ne.s32.totalorder %s2252_s10, %s1919_s21  ;;  %p1923_p12 = scmp.lt.u32.totalorder %s1919_s21, %s2252_s10 }
 0x2b6   :  { %p1925_p13 = pnand %p1923_p12, %p1920_p11 }
 0x2b8   :  { %1928 = shalt.err (!%p1925_p13)
}
 0x2b9   :  { %1283 = dma.vmem_to_hbm [thread:$0]  %s1281_s20, 128, %s2252_s10, [#allocation4]   ;;  %v1106_v38 = vld [vmem:[%s2251_s9] sm:$0x3] }
 0x2ba   :  { %v1111_v48 = vrot.slane %v1106_v38, %v2146_v39  ;;  %v1115_v50 = vrot.slane %v1106_v38, %v2152_v41  ;;  %s1979_s10 = smov [#allocation14]  }
 0x2bb   :  { %s1290_s9 = sshll.u32 %s1979_s10, 4  ;;  %s1291_s9 = int_to_ptr.vmem [resolvable:$true] %s1290_s9 }
 0x2bc   :  { %s1929_s25 = scalar_lea.vmem %s1291_s9, 256  ;;  %p1934_p1 = scmp.lt.s32.totalorder %s1291_s9, %s1291_s9 }
 0x2bd   :  { %p1930_p0 = scmp.ne.s32.totalorder %s1291_s9, %s1929_s25  ;;  %p1935_p2 = scmp.lt.s32.totalorder %s1929_s25, %s1929_s25 }
 0x2bf   :  { %p1936_p3 = por %p1935_p2, %p1934_p1 }
 0x2c1   :  { %p1937_p4 = pnand %p1936_p3, %p1930_p0 }
 0x384   :  { %v1255_v34 = vpop.f32.mrb[4].mxu1 }
 0x385   :  { %v1740_v31 = vadd.f32 %v1255_v34, %v1111_v48  ;;  %v1257_v32 = vpop.f32.mrb[5].mxu1 }
 0x386   :  { %v1741_v33 = vadd.f32 %v1257_v32, %v1115_v50 }
 0x387   :  { %v1310_v35 = vmul.f32 -1.442695, %v1740_v31 }
 0x388   :  { %v1311_v36 = vmul.f32 -1.442695, %v1741_v33 }
 0x389   :  { %1767 = vpow2.f32 %v1310_v35 }
 0x38a   :  { %1769 = vpow2.f32 %v1311_v36 }
 0x393   :  { %v1768_v40 = vpop.eup %1767 }
 0x394   :  { %v1770_v42 = vpop.eup %1769  ;;  %v1266_v43 = vadd.f32 1.0, %v1768_v40 }
 0x395   :  { %v1267_v44 = vadd.f32 1.0, %v1770_v42 }
 0x396   :  { %1771 = vrcp.f32 %v1266_v43 }
 0x397   :  { %1773 = vrcp.f32 %v1267_v44 }
 0x3a0   :  { %v1772_v45 = vpop.eup %1771 }
 0x3a1   :  { %v1774_v39 = vpop.eup %1773  ;;  %1272 = vst [vmem:[#allocation14] sm:$0xff] %v1772_v45 }
 0x3a2   :  { %1273 = vst [vmem:[#allocation14 + $0x8] sm:$0xff] %v1774_v39 }
 0x3a3   :  { %1940 = shalt.err (!%p1937_p4)
}
 0x3a4   :  { %s1941_s12 = scalar_lea.hbm %s2253_s11, 256 }
 0x3a5   :  { %p1942_p5 = scmp.ne.s32.totalorder %s2253_s11, %s1941_s12  ;;  %p1945_p6 = scmp.lt.u32.totalorder %s1941_s12, %s2253_s11 }
 0x3a7   :  { %p1947_p7 = pnand %p1945_p6, %p1942_p5 }
 0x3a9   :  { %1950 = shalt.err (!%p1947_p7)
}
 0x3aa   :  { %1293 = dma.vmem_to_hbm [thread:$0]  %s1291_s9, 256, %s2253_s11, [#allocation15]  }
 0x3ab   :  { %1959 = dma.done.wait [#allocation4], 128  }
 0x3ac   :  { %1960 = vsyncadd [#allocation4], 4294967168 }
 0x3ad   :  { %1961 = dma.done.wait [#allocation15], 256  }
 0x3ae   :  { %1962 = vsyncadd [#allocation15], 4294967040 }
 0x3af   :  { %1300 = vsyncpa [#allocation3], 1 }
 0x3b0   :  { %1301 = vsyncpa [#allocation6], 1 }
 0x3b1   :  { %1302 = vsyncpa [#allocation9], 1 }
 0x3b2   :  { %1303 = vsyncpa [#allocation12], 1 }
 0x3b3   :  { %1304 = vsyncpa [#allocation4], 1 }
 0x3b4   :  { %1305 = vsyncpa [#allocation15], 1 }

</bundles_post_ra>
